<compile_context>
chip_gen: v6e
topology: v6e:2x2x1
jax: 0.10.0
libtpu: 0.0.40
codegen_flags: <defaults>
</compile_context>

<pallas_src>
import jax
import jax.numpy as jnp
from jax.experimental import pallas as pl
from jax.experimental.pallas import tpu as pltpu


def _sigmoid(x):
    # Explicit exp form so kernel and reference use identical math.
    return 1.0 / (1.0 + jnp.exp(-x))


def _round_up(x, m):
    return (x + m - 1) // m * m


def _pad_gate_cols(w, h, hp):
    """(rows, 4*h) -> (rows, 4*hp): each gate's h columns zero-padded to hp."""
    if hp == h:
        return w
    parts = [jnp.pad(w[:, k * h:(k + 1) * h], ((0, 0), (0, hp - h)))
             for k in range(4)]
    return jnp.concatenate(parts, axis=1)


# ---------------------------------------------------------------------------
# Kernel 1: single-layer LSTM (batch_first semantics), chunked over time
# ---------------------------------------------------------------------------
def lstm_kernel(x_ref, wih_ref, whh_ref, b_ref, hs_ref,
                gx_scr, hsbuf_scr, h_scr, c_scr):
    # x_ref:     (tc, tb, Dp) bf16  time-major embedding chunk
    # wih_ref:   (Dp, 4*Hp) bf16    whh_ref: (Hp, 4*Hp) bf16
    # b_ref:     (1, 4*Hp) f32      (b_ih + b_hh, gate order i, f, g, o)
    # hs_ref:    (tb, tc, Hp) bf16  batch-major hidden-state output block
    # gx_scr:    (tc, tb, 4*Hp) f32 hoisted input projection
    # hsbuf_scr: (tc, tb, Hp) f32   time-major chunk buffer of hidden states
    # h_scr/c_scr: (tb, Hp) f32     recurrent state, carried across time chunks
    tc, tb, dp = x_ref.shape
    hp = h_scr.shape[-1]

    @pl.when(pl.program_id(1) == 0)          # first time chunk of this batch tile
    def _():
        h_scr[...] = jnp.zeros_like(h_scr)
        c_scr[...] = jnp.zeros_like(c_scr)

    # Hoisted input projection: one MXU-shaped matmul per chunk, bias added once.
    x2d = x_ref[...].reshape(tc * tb, dp)
    gx = jnp.dot(x2d, wih_ref[...], preferred_element_type=jnp.float32) + b_ref[...]
    gx_scr[...] = gx.reshape(tc, tb, 4 * hp)

    @pl.loop(0, tc)
    def _(t):
        gates = gx_scr[t] + jnp.dot(h_scr[...].astype(jnp.bfloat16), whh_ref[...],
                                    preferred_element_type=jnp.float32)
        i_g = _sigmoid(gates[:, 0 * hp:1 * hp])      # lane-aligned slices (Hp % 128 == 0)
        f_g = _sigmoid(gates[:, 1 * hp:2 * hp])
        g_g = jnp.tanh(gates[:, 2 * hp:3 * hp])
        o_g = _sigmoid(gates[:, 3 * hp:4 * hp])
        c_new = f_g * c_scr[...] + i_g * g_g
        h_new = o_g * jnp.tanh(c_new)
        c_scr[...] = c_new
        h_scr[...] = h_new
        hsbuf_scr[pl.ds(t, 1), :, :] = h_new[None, :, :]   # full (tb, Hp) tile store

    # Permute the time-major chunk buffer into the batch-major output block
    # with tb strided row copies (every store is a full (tc, Hp) tile, so the
    # downstream classifier reads batch-major rows with no extra HBM pass).
    for r in range(tb):                       # tb is small & static
        hs_ref[r, :, :] = hsbuf_scr[:, r, :].astype(hs_ref.dtype)


def lstm_forward(token_ids, emb, w_ih, w_hh, b_lstm, *,
                 batch_tile=8, time_chunk=64):
    """token_ids (B, S) int32 -> hidden states (Bp, S, Hp) bf16, batch-major."""
    B, S = token_ids.shape
    V, D = emb.shape
    H = w_hh.shape[0]
    Hp, Dp = _round_up(H, 128), _round_up(D, 128)
    tb = batch_tile
    assert tb % 8 == 0
    Bp = _round_up(B, tb)
    tc = min(time_chunk, S)
    assert S % tc == 0, "sequence length must be a multiple of the time chunk"

    # Weight prep (XLA): per-gate zero-padding to lane-aligned Hp, bf16 cast.
    wih_p = jnp.pad(_pad_gate_cols(w_ih, H, Hp),
                    ((0, Dp - D), (0, 0))).astype(jnp.bfloat16)
    whh_p = jnp.pad(_pad_gate_cols(w_hh, H, Hp),
                    ((0, Hp - H), (0, 0))).astype(jnp.bfloat16)
    b_p = _pad_gate_cols(b_lstm.reshape(1, 4 * H), H, Hp).astype(jnp.float32)

    # Embedding gather in XLA (table stays in HBM; only gathered rows move).
    emb_p = jnp.pad(emb, ((0, 0), (0, Dp - D))).astype(jnp.bfloat16)
    ids_p = jnp.pad(token_ids.astype(jnp.int32), ((0, Bp - B), (0, 0)))
    x_tm = emb_p[ids_p.T]                                   # (S, Bp, Dp) bf16

    hs = pl.pallas_call(
        lstm_kernel,
        out_shape=jax.ShapeDtypeStruct((Bp, S, Hp), jnp.bfloat16),
        grid_spec=pltpu.PrefetchScalarGridSpec(
            num_scalar_prefetch=0,
            grid=(Bp // tb, S // tc),           # (batch tiles, time chunks)
            in_specs=[
                pl.BlockSpec((tc, tb, Dp), lambda bi, ci: (ci, bi, 0)),   # x chunk
                pl.BlockSpec((Dp, 4 * Hp), lambda bi, ci: (0, 0)),        # W_ih
                pl.BlockSpec((Hp, 4 * Hp), lambda bi, ci: (0, 0)),        # W_hh
                pl.BlockSpec((1, 4 * Hp), lambda bi, ci: (0, 0)),         # bias
            ],
            out_specs=pl.BlockSpec((tb, tc, Hp), lambda bi, ci: (bi, ci, 0)),
            scratch_shapes=[
                pltpu.VMEM((tc, tb, 4 * Hp), jnp.float32),   # gates_x
                pltpu.VMEM((tc, tb, Hp), jnp.float32),       # hidden chunk buffer
                pltpu.VMEM((tb, Hp), jnp.float32),           # h state
                pltpu.VMEM((tb, Hp), jnp.float32),           # c state
            ],
        ),
        compiler_params=pltpu.CompilerParams(
            dimension_semantics=("parallel", "arbitrary"),
            vmem_limit_bytes=32 * 1024 * 1024),
    )(x_tm, wih_p, whh_p, b_p)
    return hs, Hp


# ---------------------------------------------------------------------------
# Kernel 2a: vocab-tiled logits + online softmax statistics (running max/sum)
# ---------------------------------------------------------------------------
def logits_stats_kernel(x_ref, w_ref, b_ref, logits_ref, m_ref, l_ref):
    # x_ref: (tm, Hp) bf16   w_ref: (Hp, tv) bf16   b_ref: (1, tv) f32
    # logits_ref: (tm, tv) f32   m_ref/l_ref: (tm, 1) f32, resident over vocab tiles
    @pl.when(pl.program_id(1) == 0)
    def _():
        m_ref[...] = jnp.full_like(m_ref, -jnp.inf)
        l_ref[...] = jnp.zeros_like(l_ref)

    logits = jnp.dot(x_ref[...], w_ref[...],
                     preferred_element_type=jnp.float32) + b_ref[...]
    logits_ref[...] = logits
    m_prev = m_ref[...]
    m_new = jnp.maximum(m_prev, jnp.max(logits, axis=-1, keepdims=True))
    l_ref[...] = (l_ref[...] * jnp.exp(m_prev - m_new)
                  + jnp.sum(jnp.exp(logits - m_new), axis=-1, keepdims=True))
    m_ref[...] = m_new


# ---------------------------------------------------------------------------
# Kernel 2b: normalize with the row statistics
# ---------------------------------------------------------------------------
def softmax_norm_kernel(logits_ref, m_ref, l_ref, o_ref):
    inv = pl.reciprocal(l_ref[...], approx=True)   # EUP slot, vs a (tm, tv) divide
    o_ref[...] = (jnp.exp(logits_ref[...] - m_ref[...]) * inv).astype(o_ref.dtype)


def classify_softmax_forward(x2d, w_clf, b_clf, *, row_tile=256, vocab_tile=512):
    """x2d (N, Hp) bf16 (batch-major rows, H zero-padded to Hp) ->
    softmax(x2d @ w_clf + b_clf) as (N, V) f32."""
    N, Hp = x2d.shape
    H, V = w_clf.shape
    Vp = _round_up(V, 128)

    n8 = _round_up(N, 8)
    tm = min(row_tile, n8)
    if n8 // tm < 2 and n8 >= 16:        # keep >=2 row tiles (megacore / pipelining)
        tm = max(8, (tm // 2) // 8 * 8)
    Np = _round_up(N, tm)
    tv = min(vocab_tile, Vp)
    if Vp % tv:
        tv = 128

    x_pad = jnp.pad(x2d, ((0, Np - N), (0, 0)))
    w_p = jnp.pad(w_clf, ((0, Hp - H), (0, Vp - V))).astype(jnp.bfloat16)
    # Padded vocab columns get a very negative bias so they vanish in softmax.
    b_p = jnp.pad(b_clf.astype(jnp.float32), (0, Vp - V),
                  constant_values=-1e30).reshape(1, Vp)

    grid = (Np // tm, Vp // tv)
    logits, m, l = pl.pallas_call(
        logits_stats_kernel,
        out_shape=(jax.ShapeDtypeStruct((Np, Vp), jnp.float32),
                   jax.ShapeDtypeStruct((Np, 1), jnp.float32),
                   jax.ShapeDtypeStruct((Np, 1), jnp.float32)),
        grid_spec=pltpu.PrefetchScalarGridSpec(
            num_scalar_prefetch=0,
            grid=grid,
            in_specs=[
                pl.BlockSpec((tm, Hp), lambda i, j: (i, 0)),
                pl.BlockSpec((Hp, tv), lambda i, j: (0, j)),
                pl.BlockSpec((1, tv), lambda i, j: (0, j)),
            ],
            out_specs=[
                pl.BlockSpec((tm, tv), lambda i, j: (i, j)),
                pl.BlockSpec((tm, 1), lambda i, j: (i, 0)),
                pl.BlockSpec((tm, 1), lambda i, j: (i, 0)),
            ],
        ),
        compiler_params=pltpu.CompilerParams(
            dimension_semantics=("parallel", "arbitrary"),
            vmem_limit_bytes=32 * 1024 * 1024),
        cost_estimate=pl.CostEstimate(
            flops=2 * Np * Hp * Vp,
            transcendentals=Np * Vp,
            bytes_accessed=2 * Np * Hp + 2 * Hp * Vp + 4 * Vp + 4 * Np * Vp),
    )(x_pad, w_p, b_p)

    # TODO(synk): at very large V, recompute the logits tile in the normalize
    # pass (or store them in bf16) to cut the HBM round trip; probs could also
    # be emitted in bf16 when the consumer allows it.
    probs = pl.pallas_call(
        softmax_norm_kernel,
        out_shape=jax.ShapeDtypeStruct((Np, Vp), jnp.float32),
        grid_spec=pltpu.PrefetchScalarGridSpec(
            num_scalar_prefetch=0,
            grid=grid,
            in_specs=[
                pl.BlockSpec((tm, tv), lambda i, j: (i, j)),
                pl.BlockSpec((tm, 1), lambda i, j: (i, 0)),
                pl.BlockSpec((tm, 1), lambda i, j: (i, 0)),
            ],
            out_specs=pl.BlockSpec((tm, tv), lambda i, j: (i, j)),
        ),
        compiler_params=pltpu.CompilerParams(
            dimension_semantics=("parallel", "parallel"),
            vmem_limit_bytes=32 * 1024 * 1024),
    )(logits, m, l)
    return probs[:N, :V]


# ---------------------------------------------------------------------------
# Full forward (inference branch of LanguageModel.forward, y=None)
# ---------------------------------------------------------------------------
def language_model_forward(token_ids, params, *, batch_tile=8, time_chunk=64,
                           row_tile=256, vocab_tile=512):
    emb, w_ih, w_hh, b_lstm, w_clf, b_clf = params
    B, S = token_ids.shape
    V = w_clf.shape[1]
    # TODO(synk): the y != None training branch (cross_entropy over logits) is
    # a loss, not a forward op, and is not implemented here.
    hs, Hp = lstm_forward(token_ids, emb, w_ih, w_hh, b_lstm,
                          batch_tile=batch_tile, time_chunk=time_chunk)
    x2d = hs[:B].reshape(B * S, Hp)            # batch-major rows, no transpose
    probs = classify_softmax_forward(x2d, w_clf, b_clf,
                                     row_tile=row_tile, vocab_tile=vocab_tile)
    return probs.reshape(B, S, V)              # free reshape, already (B, S) major


# ---------------------------------------------------------------------------
# Parameter init mirroring PyTorch defaults (weights stored transposed so the
# kernels compute x @ W directly; LSTM gate order is i, f, g, o).
# ---------------------------------------------------------------------------
def init_params(key, vocab_size, d_model):
    H = d_model
    k = jax.random.split(key, 7)
    emb = jax.random.normal(k[0], (vocab_size, d_model), jnp.float32)
    lim = 1.0 / (H ** 0.5)
    w_ih = jax.random.uniform(k[1], (d_model, 4 * H), jnp.float32, -lim, lim)
    w_hh = jax.random.uniform(k[2], (H, 4 * H), jnp.float32, -lim, lim)
    b_ih = jax.random.uniform(k[3], (4 * H,), jnp.float32, -lim, lim)
    b_hh = jax.random.uniform(k[4], (4 * H,), jnp.float32, -lim, lim)
    w_clf = jax.random.uniform(k[5], (H, vocab_size), jnp.float32, -lim, lim)
    b_clf = jax.random.uniform(k[6], (vocab_size,), jnp.float32, -lim, lim)
    return emb, w_ih, w_hh, b_ih + b_hh, w_clf, b_clf


# ---------------------------------------------------------------------------
# Pure-JAX reference (same math, same bf16-at-the-matmul-boundary casts)
# ---------------------------------------------------------------------------
def reference_forward(token_ids, params):
    emb, w_ih, w_hh, b_lstm, w_clf, b_clf = params
    H = w_hh.shape[0]
    V = w_clf.shape[1]
    B, S = token_ids.shape
    x = emb[token_ids].astype(jnp.bfloat16)                  # (B, S, D)
    wih_b = w_ih.astype(jnp.bfloat16)
    whh_b = w_hh.astype(jnp.bfloat16)

    def step(carry, x_t):                                    # x_t: (B, D) bf16
        h, c = carry
        gates = (jnp.dot(x_t, wih_b, preferred_element_type=jnp.float32)
                 + b_lstm
                 + jnp.dot(h.astype(jnp.bfloat16), whh_b,
                           preferred_element_type=jnp.float32))
        i_g = _sigmoid(gates[:, 0 * H:1 * H])
        f_g = _sigmoid(gates[:, 1 * H:2 * H])
        g_g = jnp.tanh(gates[:, 2 * H:3 * H])
        o_g = _sigmoid(gates[:, 3 * H:4 * H])
        c = f_g * c + i_g * g_g
        h = o_g * jnp.tanh(c)
        return (h, c), h

    init = (jnp.zeros((B, H), jnp.float32), jnp.zeros((B, H), jnp.float32))
    _, hs = jax.lax.scan(step, init, jnp.swapaxes(x, 0, 1))  # (S, B, H) f32
    hs = jnp.swapaxes(hs, 0, 1).astype(jnp.bfloat16)         # as stored by the kernel
    logits = jnp.dot(hs.reshape(B * S, H), w_clf.astype(jnp.bfloat16),
                     preferred_element_type=jnp.float32) + b_clf
    return jax.nn.softmax(logits, axis=-1).reshape(B, S, V)


if __name__ == "__main__":
    # Small shapes consistent with the module: ids (batch, seq); input_dim ==
    # LSTM hidden size.  seq=16 with time_chunk=8 exercises the cross-chunk
    # (h, c) carry; vocab=256 with vocab_tile=128 exercises the online softmax.
    batch, seq, d_model, vocab_size = 2, 16, 32, 256

    key = jax.random.PRNGKey(0)
    k_ids, k_params = jax.random.split(key)
    token_ids = jax.random.randint(k_ids, (batch, seq), 0, vocab_size,
                                   dtype=jnp.int32)
    params = init_params(k_params, vocab_size, d_model)

    out = language_model_forward(token_ids, params,
                                 time_chunk=8, vocab_tile=128)
    out = jax.block_until_ready(out)

    ref = reference_forward(token_ids, params)
    assert out.shape == (batch, seq, vocab_size)
    assert bool(jnp.allclose(jnp.sum(out, axis=-1), 1.0, atol=5e-3)), \
        "softmax rows must sum to 1"
    assert bool(jnp.allclose(out, ref, atol=5e-3, rtol=2e-2)), \
        "mismatch vs pure-JAX reference"

    print("KERNEL_OK")
</pallas_src>

<mosaic_0001>
module attributes {stable_mosaic.version = 11 : i64} {
  func.func @lstm_kernel(%arg0: i32, %arg1: i32, %arg2: memref<8x8x128xbf16, #tpu.memory_space<vmem>>, %arg3: memref<128x512xbf16, #tpu.memory_space<vmem>>, %arg4: memref<128x512xbf16, #tpu.memory_space<vmem>>, %arg5: memref<1x512xf32, #tpu.memory_space<vmem>>, %arg6: memref<8x8x128xbf16, #tpu.memory_space<vmem>>, %arg7: memref<8x8x512xf32, #tpu.memory_space<vmem>>, %arg8: memref<8x8x128xf32, #tpu.memory_space<vmem>>, %arg9: memref<8x128xf32, #tpu.memory_space<vmem>>, %arg10: memref<8x128xf32, #tpu.memory_space<vmem>>) attributes {dimension_semantics = [#tpu.dimension_semantics<parallel>, #tpu.dimension_semantics<arbitrary>], iteration_bounds = array<i64: 1, 2>, scalar_prefetch = 0 : i64, scratch_operands = 4 : i64, tpu.core_type = #tpu.core_type<tc>, window_params = [{transform_indices = @transform_0, window_bounds = array<i64: 8, 8, 128>}, {pipeline_mode = #tpu.pipeline_mode<synchronous>, transform_indices = @transform_1, window_bounds = array<i64: 128, 512>}, {pipeline_mode = #tpu.pipeline_mode<synchronous>, transform_indices = @transform_2, window_bounds = array<i64: 128, 512>}, {pipeline_mode = #tpu.pipeline_mode<synchronous>, transform_indices = @transform_3, window_bounds = array<i64: 1, 512>}, {transform_indices = @transform_4, window_bounds = array<i64: 8, 8, 128>}]} {
    %c0_i32 = arith.constant 0 : i32
    %0 = arith.cmpi eq, %arg1, %c0_i32 : i32
    %1 = arith.extui %0 : i1 to i32
    %c0_i32_0 = arith.constant 0 : i32
    %2 = arith.cmpi ne, %1, %c0_i32_0 : i32
    scf.if %2 {
      %cst_53 = arith.constant 0.000000e+00 : f32
      %61 = vector.broadcast %cst_53 : f32 to vector<8x128xf32>
      %c0_54 = arith.constant 0 : index
      %c0_55 = arith.constant 0 : index
      %62 = vector.load %arg9[%c0_54, %c0_55] : memref<8x128xf32, #tpu.memory_space<vmem>>, vector<8x128xf32>
      tpu.vector_store %arg9[%c0_54, %c0_55], %61 {strides = array<i32>} : memref<8x128xf32, #tpu.memory_space<vmem>>, vector<8x128xf32>,
      %cst_56 = arith.constant 0.000000e+00 : f32
      %63 = vector.broadcast %cst_56 : f32 to vector<8x128xf32>
      %c0_57 = arith.constant 0 : index
      %c0_58 = arith.constant 0 : index
      %64 = vector.load %arg10[%c0_57, %c0_58] : memref<8x128xf32, #tpu.memory_space<vmem>>, vector<8x128xf32>
      tpu.vector_store %arg10[%c0_57, %c0_58], %63 {strides = array<i32>} : memref<8x128xf32, #tpu.memory_space<vmem>>, vector<8x128xf32>,
    } else {
    }
    %c0 = arith.constant 0 : index
    %c0_1 = arith.constant 0 : index
    %c0_2 = arith.constant 0 : index
    %3 = vector.load %arg2[%c0, %c0_1, %c0_2] : memref<8x8x128xbf16, #tpu.memory_space<vmem>>, vector<8x8x128xbf16>
    %4 = vector.shape_cast %3 : vector<8x8x128xbf16> to vector<64x128xbf16>
    %c0_3 = arith.constant 0 : index
    %c0_4 = arith.constant 0 : index
    %5 = vector.load %arg3[%c0_3, %c0_4] : memref<128x512xbf16, #tpu.memory_space<vmem>>, vector<128x512xbf16>
    %cst = arith.constant dense<0.000000e+00> : vector<64x512xf32>
    %6 = tpu.matmul %4, %5, %cst {dimension_numbers = #tpu.dot_dimension_numbers<[1], [0], [0], [1], [0, 0, 1, 1], [], []>} : vector<64x128xbf16>, vector<128x512xbf16>, vector<64x512xf32> -> vector<64x512xf32>
    %c0_5 = arith.constant 0 : index
    %c0_6 = arith.constant 0 : index
    %7 = vector.load %arg5[%c0_5, %c0_6] : memref<1x512xf32, #tpu.memory_space<vmem>>, vector<1x512xf32>
    %8 = vector.broadcast %7 : vector<1x512xf32> to vector<64x512xf32>
    %9 = arith.addf %6, %8 : vector<64x512xf32>
    %10 = vector.shape_cast %9 : vector<64x512xf32> to vector<8x8x512xf32>
    %c0_7 = arith.constant 0 : index
    %c0_8 = arith.constant 0 : index
    %c0_9 = arith.constant 0 : index
    %11 = vector.load %arg7[%c0_7, %c0_8, %c0_9] : memref<8x8x512xf32, #tpu.memory_space<vmem>>, vector<8x8x512xf32>
    tpu.vector_store %arg7[%c0_7, %c0_8, %c0_9], %10 {strides = array<i32>} : memref<8x8x512xf32, #tpu.memory_space<vmem>>, vector<8x8x512xf32>,
    %c0_i32_10 = arith.constant 0 : i32
    %c8_i32 = arith.constant 8 : i32
    %12 = arith.addi %c0_i32_10, %c8_i32 : i32
    %c1_i32 = arith.constant 1 : i32
    scf.for %arg11 = %c0_i32_10 to %12 step %c1_i32  : i32 {
      %c1_i32_53 = arith.constant 1 : i32
      %61 = arith.muli %arg11, %c1_i32_53 : i32
      %c0_i32_54 = arith.constant 0 : i32
      %62 = arith.addi %c0_i32_54, %61 : i32
      %63 = arith.index_cast %62 : i32 to index
      %c0_55 = arith.constant 0 : index
      %c0_56 = arith.constant 0 : index
      %64 = vector.load %arg7[%63, %c0_55, %c0_56] : memref<8x8x512xf32, #tpu.memory_space<vmem>>, vector<1x8x512xf32>
      %65 = vector.shape_cast %64 : vector<1x8x512xf32> to vector<8x512xf32>
      %c0_57 = arith.constant 0 : index
      %c0_58 = arith.constant 0 : index
      %66 = vector.load %arg9[%c0_57, %c0_58] : memref<8x128xf32, #tpu.memory_space<vmem>>, vector<8x128xf32>
      %67 = arith.truncf %66 : vector<8x128xf32> to vector<8x128xbf16>
      %c0_59 = arith.constant 0 : index
      %c0_60 = arith.constant 0 : index
      %68 = vector.load %arg4[%c0_59, %c0_60] : memref<128x512xbf16, #tpu.memory_space<vmem>>, vector<128x512xbf16>
      %cst_61 = arith.constant dense<0.000000e+00> : vector<8x512xf32>
      %69 = tpu.matmul %67, %68, %cst_61 {dimension_numbers = #tpu.dot_dimension_numbers<[1], [0], [0], [1], [0, 0, 1, 1], [], []>} : vector<8x128xbf16>, vector<128x512xbf16>, vector<8x512xf32> -> vector<8x512xf32>
      %70 = arith.addf %65, %69 : vector<8x512xf32>
      %71 = vector.extract_strided_slice %70 {offsets = [0, 0], sizes = [8, 128], strides = [1, 1]} : vector<8x512xf32> to vector<8x128xf32>
      %cst_62 = arith.constant 0.000000e+00 : f32
      %72 = vector.broadcast %cst_62 : f32 to vector<8x128xf32>
      %73 = arith.subf %72, %71 : vector<8x128xf32>
      %74 = math.exp %73 : vector<8x128xf32>
      %cst_63 = arith.constant 1.000000e+00 : f32
      %75 = vector.broadcast %cst_63 : f32 to vector<8x128xf32>
      %76 = arith.addf %75, %74 : vector<8x128xf32>
      %cst_64 = arith.constant 1.000000e+00 : f32
      %77 = vector.broadcast %cst_64 : f32 to vector<8x128xf32>
      %78 = arith.divf %77, %76 : vector<8x128xf32>
      %79 = vector.extract_strided_slice %70 {offsets = [0, 128], sizes = [8, 128], strides = [1, 1]} : vector<8x512xf32> to vector<8x128xf32>
      %cst_65 = arith.constant 0.000000e+00 : f32
      %80 = vector.broadcast %cst_65 : f32 to vector<8x128xf32>
      %81 = arith.subf %80, %79 : vector<8x128xf32>
      %82 = math.exp %81 : vector<8x128xf32>
      %cst_66 = arith.constant 1.000000e+00 : f32
      %83 = vector.broadcast %cst_66 : f32 to vector<8x128xf32>
      %84 = arith.addf %83, %82 : vector<8x128xf32>
      %cst_67 = arith.constant 1.000000e+00 : f32
      %85 = vector.broadcast %cst_67 : f32 to vector<8x128xf32>
      %86 = arith.divf %85, %84 : vector<8x128xf32>
      %87 = vector.extract_strided_slice %70 {offsets = [0, 256], sizes = [8, 128], strides = [1, 1]} : vector<8x512xf32> to vector<8x128xf32>
      %88 = math.tanh %87 : vector<8x128xf32>
      %89 = vector.extract_strided_slice %70 {offsets = [0, 384], sizes = [8, 128], strides = [1, 1]} : vector<8x512xf32> to vector<8x128xf32>
      %cst_68 = arith.constant 0.000000e+00 : f32
      %90 = vector.broadcast %cst_68 : f32 to vector<8x128xf32>
      %91 = arith.subf %90, %89 : vector<8x128xf32>
      %92 = math.exp %91 : vector<8x128xf32>
      %cst_69 = arith.constant 1.000000e+00 : f32
      %93 = vector.broadcast %cst_69 : f32 to vector<8x128xf32>
      %94 = arith.addf %93, %92 : vector<8x128xf32>
      %cst_70 = arith.constant 1.000000e+00 : f32
      %95 = vector.broadcast %cst_70 : f32 to vector<8x128xf32>
      %96 = arith.divf %95, %94 : vector<8x128xf32>
      %c0_71 = arith.constant 0 : index
      %c0_72 = arith.constant 0 : index
      %97 = vector.load %arg10[%c0_71, %c0_72] : memref<8x128xf32, #tpu.memory_space<vmem>>, vector<8x128xf32>
      %98 = arith.mulf %86, %97 : vector<8x128xf32>
      %99 = arith.mulf %78, %88 : vector<8x128xf32>
      %100 = arith.addf %98, %99 : vector<8x128xf32>
      %101 = math.tanh %100 : vector<8x128xf32>
      %102 = arith.mulf %96, %101 : vector<8x128xf32>
      %c0_73 = arith.constant 0 : index
      %c0_74 = arith.constant 0 : index
      %103 = vector.load %arg10[%c0_73, %c0_74] : memref<8x128xf32, #tpu.memory_space<vmem>>, vector<8x128xf32>
      tpu.vector_store %arg10[%c0_73, %c0_74], %100 {strides = array<i32>} : memref<8x128xf32, #tpu.memory_space<vmem>>, vector<8x128xf32>,
      %c0_75 = arith.constant 0 : index
      %c0_76 = arith.constant 0 : index
      %104 = vector.load %arg9[%c0_75, %c0_76] : memref<8x128xf32, #tpu.memory_space<vmem>>, vector<8x128xf32>
      tpu.vector_store %arg9[%c0_75, %c0_76], %102 {strides = array<i32>} : memref<8x128xf32, #tpu.memory_space<vmem>>, vector<8x128xf32>,
      %105 = vector.shape_cast %102 : vector<8x128xf32> to vector<1x8x128xf32>
      %106 = arith.index_cast %62 : i32 to index
      %c0_77 = arith.constant 0 : index
      %c0_78 = arith.constant 0 : index
      %107 = vector.load %arg8[%106, %c0_77, %c0_78] : memref<8x8x128xf32, #tpu.memory_space<vmem>>, vector<1x8x128xf32>
      tpu.vector_store %arg8[%106, %c0_77, %c0_78], %105 {strides = array<i32>} : memref<8x8x128xf32, #tpu.memory_space<vmem>>, vector<1x8x128xf32>,
    }
    %c8_i32_11 = arith.constant 8 : i32
    %c0_12 = arith.constant 0 : index
    %c0_13 = arith.constant 0 : index
    %c0_14 = arith.constant 0 : index
    %13 = vector.load %arg8[%c0_12, %c0_13, %c0_14] : memref<8x8x128xf32, #tpu.memory_space<vmem>>, vector<8x1x128xf32>
    %14 = vector.shape_cast %13 : vector<8x1x128xf32> to vector<8x128xf32>
    %15 = arith.truncf %14 : vector<8x128xf32> to vector<8x128xbf16>
    %c0_15 = arith.constant 0 : index
    %c0_16 = arith.constant 0 : index
    %c0_17 = arith.constant 0 : index
    %16 = vector.load %arg6[%c0_15, %c0_16, %c0_17] : memref<8x8x128xbf16, #tpu.memory_space<vmem>>, vector<1x8x128xbf16>
    %17 = vector.shape_cast %16 : vector<1x8x128xbf16> to vector<8x128xbf16>
    %18 = vector.shape_cast %15 : vector<8x128xbf16> to vector<1x8x128xbf16>
    tpu.vector_store %arg6[%c0_15, %c0_16, %c0_17], %18 {strides = array<i32>} : memref<8x8x128xbf16, #tpu.memory_space<vmem>>, vector<1x8x128xbf16>,
    %c0_18 = arith.constant 0 : index
    %c1 = arith.constant 1 : index
    %c0_19 = arith.constant 0 : index
    %19 = vector.load %arg8[%c0_18, %c1, %c0_19] : memref<8x8x128xf32, #tpu.memory_space<vmem>>, vector<8x1x128xf32>
    %20 = vector.shape_cast %19 : vector<8x1x128xf32> to vector<8x128xf32>
    %21 = arith.truncf %20 : vector<8x128xf32> to vector<8x128xbf16>
    %c1_20 = arith.constant 1 : index
    %c0_21 = arith.constant 0 : index
    %c0_22 = arith.constant 0 : index
    %22 = vector.load %arg6[%c1_20, %c0_21, %c0_22] : memref<8x8x128xbf16, #tpu.memory_space<vmem>>, vector<1x8x128xbf16>
    %23 = vector.shape_cast %22 : vector<1x8x128xbf16> to vector<8x128xbf16>
    %24 = vector.shape_cast %21 : vector<8x128xbf16> to vector<1x8x128xbf16>
    tpu.vector_store %arg6[%c1_20, %c0_21, %c0_22], %24 {strides = array<i32>} : memref<8x8x128xbf16, #tpu.memory_space<vmem>>, vector<1x8x128xbf16>,
    %c0_23 = arith.constant 0 : index
    %c2 = arith.constant 2 : index
    %c0_24 = arith.constant 0 : index
    %25 = vector.load %arg8[%c0_23, %c2, %c0_24] : memref<8x8x128xf32, #tpu.memory_space<vmem>>, vector<8x1x128xf32>
    %26 = vector.shape_cast %25 : vector<8x1x128xf32> to vector<8x128xf32>
    %27 = arith.truncf %26 : vector<8x128xf32> to vector<8x128xbf16>
    %c2_25 = arith.constant 2 : index
    %c0_26 = arith.constant 0 : index
    %c0_27 = arith.constant 0 : index
    %28 = vector.load %arg6[%c2_25, %c0_26, %c0_27] : memref<8x8x128xbf16, #tpu.memory_space<vmem>>, vector<1x8x128xbf16>
    %29 = vector.shape_cast %28 : vector<1x8x128xbf16> to vector<8x128xbf16>
    %30 = vector.shape_cast %27 : vector<8x128xbf16> to vector<1x8x128xbf16>
    tpu.vector_store %arg6[%c2_25, %c0_26, %c0_27], %30 {strides = array<i32>} : memref<8x8x128xbf16, #tpu.memory_space<vmem>>, vector<1x8x128xbf16>,
    %c0_28 = arith.constant 0 : index
    %c3 = arith.constant 3 : index
    %c0_29 = arith.constant 0 : index
    %31 = vector.load %arg8[%c0_28, %c3, %c0_29] : memref<8x8x128xf32, #tpu.memory_space<vmem>>, vector<8x1x128xf32>
    %32 = vector.shape_cast %31 : vector<8x1x128xf32> to vector<8x128xf32>
    %33 = arith.truncf %32 : vector<8x128xf32> to vector<8x128xbf16>
    %c3_30 = arith.constant 3 : index
    %c0_31 = arith.constant 0 : index
    %c0_32 = arith.constant 0 : index
    %34 = vector.load %arg6[%c3_30, %c0_31, %c0_32] : memref<8x8x128xbf16, #tpu.memory_space<vmem>>, vector<1x8x128xbf16>
    %35 = vector.shape_cast %34 : vector<1x8x128xbf16> to vector<8x128xbf16>
    %36 = vector.shape_cast %33 : vector<8x128xbf16> to vector<1x8x128xbf16>
    tpu.vector_store %arg6[%c3_30, %c0_31, %c0_32], %36 {strides = array<i32>} : memref<8x8x128xbf16, #tpu.memory_space<vmem>>, vector<1x8x128xbf16>,
    %c0_33 = arith.constant 0 : index
    %c4 = arith.constant 4 : index
    %c0_34 = arith.constant 0 : index
    %37 = vector.load %arg8[%c0_33, %c4, %c0_34] : memref<8x8x128xf32, #tpu.memory_space<vmem>>, vector<8x1x128xf32>
    %38 = vector.shape_cast %37 : vector<8x1x128xf32> to vector<8x128xf32>
    %39 = arith.truncf %38 : vector<8x128xf32> to vector<8x128xbf16>
    %c4_35 = arith.constant 4 : index
    %c0_36 = arith.constant 0 : index
    %c0_37 = arith.constant 0 : index
    %40 = vector.load %arg6[%c4_35, %c0_36, %c0_37] : memref<8x8x128xbf16, #tpu.memory_space<vmem>>, vector<1x8x128xbf16>
    %41 = vector.shape_cast %40 : vector<1x8x128xbf16> to vector<8x128xbf16>
    %42 = vector.shape_cast %39 : vector<8x128xbf16> to vector<1x8x128xbf16>
    tpu.vector_store %arg6[%c4_35, %c0_36, %c0_37], %42 {strides = array<i32>} : memref<8x8x128xbf16, #tpu.memory_space<vmem>>, vector<1x8x128xbf16>,
    %c0_38 = arith.constant 0 : index
    %c5 = arith.constant 5 : index
    %c0_39 = arith.constant 0 : index
    %43 = vector.load %arg8[%c0_38, %c5, %c0_39] : memref<8x8x128xf32, #tpu.memory_space<vmem>>, vector<8x1x128xf32>
    %44 = vector.shape_cast %43 : vector<8x1x128xf32> to vector<8x128xf32>
    %45 = arith.truncf %44 : vector<8x128xf32> to vector<8x128xbf16>
    %c5_40 = arith.constant 5 : index
    %c0_41 = arith.constant 0 : index
    %c0_42 = arith.constant 0 : index
    %46 = vector.load %arg6[%c5_40, %c0_41, %c0_42] : memref<8x8x128xbf16, #tpu.memory_space<vmem>>, vector<1x8x128xbf16>
    %47 = vector.shape_cast %46 : vector<1x8x128xbf16> to vector<8x128xbf16>
    %48 = vector.shape_cast %45 : vector<8x128xbf16> to vector<1x8x128xbf16>
    tpu.vector_store %arg6[%c5_40, %c0_41, %c0_42], %48 {strides = array<i32>} : memref<8x8x128xbf16, #tpu.memory_space<vmem>>, vector<1x8x128xbf16>,
    %c0_43 = arith.constant 0 : index
    %c6 = arith.constant 6 : index
    %c0_44 = arith.constant 0 : index
    %49 = vector.load %arg8[%c0_43, %c6, %c0_44] : memref<8x8x128xf32, #tpu.memory_space<vmem>>, vector<8x1x128xf32>
    %50 = vector.shape_cast %49 : vector<8x1x128xf32> to vector<8x128xf32>
    %51 = arith.truncf %50 : vector<8x128xf32> to vector<8x128xbf16>
    %c6_45 = arith.constant 6 : index
    %c0_46 = arith.constant 0 : index
    %c0_47 = arith.constant 0 : index
    %52 = vector.load %arg6[%c6_45, %c0_46, %c0_47] : memref<8x8x128xbf16, #tpu.memory_space<vmem>>, vector<1x8x128xbf16>
    %53 = vector.shape_cast %52 : vector<1x8x128xbf16> to vector<8x128xbf16>
    %54 = vector.shape_cast %51 : vector<8x128xbf16> to vector<1x8x128xbf16>
    tpu.vector_store %arg6[%c6_45, %c0_46, %c0_47], %54 {strides = array<i32>} : memref<8x8x128xbf16, #tpu.memory_space<vmem>>, vector<1x8x128xbf16>,
    %c0_48 = arith.constant 0 : index
    %c7 = arith.constant 7 : index
    %c0_49 = arith.constant 0 : index
    %55 = vector.load %arg8[%c0_48, %c7, %c0_49] : memref<8x8x128xf32, #tpu.memory_space<vmem>>, vector<8x1x128xf32>
    %56 = vector.shape_cast %55 : vector<8x1x128xf32> to vector<8x128xf32>
    %57 = arith.truncf %56 : vector<8x128xf32> to vector<8x128xbf16>
    %c7_50 = arith.constant 7 : index
    %c0_51 = arith.constant 0 : index
    %c0_52 = arith.constant 0 : index
    %58 = vector.load %arg6[%c7_50, %c0_51, %c0_52] : memref<8x8x128xbf16, #tpu.memory_space<vmem>>, vector<1x8x128xbf16>
    %59 = vector.shape_cast %58 : vector<1x8x128xbf16> to vector<8x128xbf16>
    %60 = vector.shape_cast %57 : vector<8x128xbf16> to vector<1x8x128xbf16>
    tpu.vector_store %arg6[%c7_50, %c0_51, %c0_52], %60 {strides = array<i32>} : memref<8x8x128xbf16, #tpu.memory_space<vmem>>, vector<1x8x128xbf16>,
    return
  }
  func.func @transform_0(%arg0: i32, %arg1: i32) -> (i32, i32, i32) {
    %c0_i32 = arith.constant 0 : i32
    %c0_i32_0 = arith.constant 0 : i32
    return %arg1, %arg0, %c0_i32 : i32, i32, i32
  }
  func.func @transform_1(%arg0: i32, %arg1: i32) -> (i32, i32) {
    %c0_i32 = arith.constant 0 : i32
    %c0_i32_0 = arith.constant 0 : i32
    %c0_i32_1 = arith.constant 0 : i32
    return %c0_i32, %c0_i32_0 : i32, i32
  }
  func.func @transform_2(%arg0: i32, %arg1: i32) -> (i32, i32) {
    %c0_i32 = arith.constant 0 : i32
    %c0_i32_0 = arith.constant 0 : i32
    %c0_i32_1 = arith.constant 0 : i32
    return %c0_i32, %c0_i32_0 : i32, i32
  }
  func.func @transform_3(%arg0: i32, %arg1: i32) -> (i32, i32) {
    %c0_i32 = arith.constant 0 : i32
    %c0_i32_0 = arith.constant 0 : i32
    %c0_i32_1 = arith.constant 0 : i32
    return %c0_i32, %c0_i32_0 : i32, i32
  }
  func.func @transform_4(%arg0: i32, %arg1: i32) -> (i32, i32, i32) {
    %c0_i32 = arith.constant 0 : i32
    %c0_i32_0 = arith.constant 0 : i32
    return %arg0, %arg1, %c0_i32 : i32, i32, i32
  }
}

</mosaic_0001>

<bundles_post_ra>
// kernel: tpu_custom_call.1
= control target key start
LH: loop header
LB: loop body
LE: loop exit
PB: predicated region body
PF: predicated region fallthrough
CT: control target
= control target key end

     0   :  { %9 = vsyncpa [#allocation7], 0  ;;  %s2661_s0 = inlined_call_operand.hbm [shape: bf16[16,8,128], index: 0, kind: input, shape index: {}]   ;;  %s2662_s1 = inlined_call_operand.hbm [shape: bf16[128,512], index: 1, kind: input, shape index: {}]   ;;  %s2663_s2 = inlined_call_operand.hbm [shape: bf16[128,512], index: 2, kind: input, shape index: {}]   ;;  %s2664_s3 = inlined_call_operand.vmem [shape: f32[1,512], index: 3, kind: input, shape index: {}]   ;;  %s2665_s4 = inlined_call_operand.hbm [shape: bf16[8,16,128], index: 4, kind: output, shape index: {}]  }
   0x1   :  { %11 = vsyncpa [#allocation7 + $0x1], 0 }
   0x2   :  { %12 = vsyncpa [#allocation10], 0 }
   0x3   :  { %13 = vsyncpa [#allocation8], 0 }
   0x4   :  { %15 = vsyncpa [#allocation8 + $0x1], 0  ;;  %s2338_s15 = smov 0   ;;  %s2340_s16 = smov 0  }
   0x5   :  { %s2342_s17 = smov 0   ;;  %s2344_s18 = smov 0  }
   0x6   :  { %s2346_s19 = smov 0   ;;  %s2348_s20 = smov 0  }
   0x7 LB: > { %s1681_s21 = sadd.s32 4294967295, %s2293_s20   ;;  %s1682_s22 = sadd.s32 4294967294, %s2293_s20   ;;  %s2293_s20 = sphi %s2348_s20, %s21_s20   ;;  %s2289_s19 = sphi %s2346_s19, %s2685_s19   ;;  %s2285_s18 = sphi %s2344_s18, %s2684_s18   ;;  %s2281_s17 = sphi %s2342_s17, %s2683_s17   ;;  %s2277_s16 = sphi %s2340_s16, %s2682_s16   ;;  %s2273_s15 = sphi %s2338_s15, %s2681_s15  }
   0x8   : > { %p55_p0 = scmp.ne.s32.totalorder %s2277_s16, %s2273_s15  ;;  %p2372_p1 = scmp.eq.s32.totalorder %s1681_s21, 0 }
   0x9   : > { %p2376_p2 = scmp.eq.s32.totalorder %s1681_s21, 1  ;;  %p150_p3 = scmp.eq.s32.totalorder %s1682_s22, 1 }
   0xa   : > { %s2669_s23 = scalar_select %p2372_p1, 1, 0 }
   0xb   : > { %p2382_p4 = por %p2372_p1, %p55_p0  ;;  %p1683_p5 = scmp.ge.s32.totalorder %s2293_s20, 1 }
   0xc   : > { %p2387_p6 = por %p150_p3, %p55_p0  ;;  %p157_p7 = scmp.lt.s32.totalorder %s2293_s20, 3 }
   0xd   : > { %s2671_s25 = scalar_select %p2382_p4, 1, 0 }
   0xe   : > { %s2672_s26 = scalar_select %p2387_p6, 1, 0 }
   0xf   : > { %p2392_p8 = pnand %p1683_p5, %p157_p7  ;;  %s2299_s28 = smov [#allocation9]  }
  0x10   : > { %s169_s29 = sshll.u32 %s2299_s28, 4  ;;  %s2300_s5 = smov [#allocation11]   ;;  %s170_s29 = int_to_ptr.vmem [resolvable:$true] %s169_s29 }
  0x11   : > { %p1920_p9 = pneg %p2392_p8  ;;  %s182_s6 = sshll.u32 %s2300_s5, 4  ;;  %s183_s6 = int_to_ptr.vmem [resolvable:$true] %s182_s6 }
  0x12   : > { %s2136_s7 = scalar_lea.vmem %s170_s29, 4096  ;;  %p2144_p5 = scmp.lt.s32.totalorder %s170_s29, %s170_s29 }
  0x13   : > { %p2401_p11 = pnand %p1920_p9, %p2372_p1  ;;  %p2137_p13 = scmp.ne.s32.totalorder %s170_s29, %s2136_s7 }
  0x14   : > { %p2145_p7 = scmp.lt.s32.totalorder %s2136_s7, %s2136_s7 }
  0x15   : > { %p2127_p12 = pneg %p2401_p11 }
  0x16   : > { %p2146_p10 = por %p2145_p7, %p2144_p5 }
  0x17   : > { %p2139_p0 = pnand %p2137_p13, %p2127_p12 }
  0x19   : > { %p2140_p3 = pneg %p2139_p0 }
  0x1b   : > { %p2147_p9 = pnand %p2146_p10, %p2140_p3 }
  0x1d   : > { %2150 = shalt.err (!%p2147_p9)
}
  0x1e   : > { %s2301_s8 = smov 256   ;;  %s2302_s9 = smov 16  }
  0x1f   : > { %1923 = dma.hbm_to_vmem [thread:$0]  (!%p2401_p11), %s2662_s1, 4096, %s170_s29, [#allocation10], %s2301_s8, %s2301_s8, %s2302_s9  }
  0x20   : > { %s2162_s12 = scalar_lea.vmem %s183_s6, 4096  ;;  %p2170_p1 = scmp.lt.s32.totalorder %s183_s6, %s183_s6 }
  0x21   : > { %p2163_p6 = scmp.ne.s32.totalorder %s183_s6, %s2162_s12  ;;  %p2171_p4 = scmp.lt.s32.totalorder %s2162_s12, %s2162_s12 }
  0x23   : > { %p2165_p13 = pnand %p2163_p6, %p2127_p12  ;;  %p2172_p5 = por %p2171_p4, %p2170_p1 }
  0x25   : > { %p2166_p0 = pneg %p2165_p13 }
  0x27   : > { %p2173_p10 = pnand %p2172_p5, %p2166_p0 }
  0x29   : > { %2176 = shalt.err (!%p2173_p10)
}
  0x2a   : > { %1926 = dma.hbm_to_vmem [thread:$0]  (!%p2401_p11), %s2663_s2, 4096, %s183_s6, [#allocation10], %s2301_s8, %s2301_s8, %s2302_s9  }
  0x2b   : > { %s30_s21 = sadd.s32 1, %s2289_s19  ;;  %s42_s22 = sadd.s32 1, %s2281_s17 }
  0x2c   : > { %p31_p1 = scmp.ge.s32.totalorder %s30_s21, 2  ;;  %p49_p4 = scmp.ne.s32.totalorder %s2281_s17, %s2277_s16 }
  0x2d   : > { %p50_p6 = scmp.eq.s32.totalorder %s2293_s20, 0  ;;  %p1937_p12 = scmp.lt.s32.totalorder %s2293_s20, 2 }
  0x2e   : > { %s2687_s21 = smov (%p31_p1, %s30_s21), 0  ;;  %p2433_p7 = por %p2376_p2, %p49_p4 }
  0x2f   : > { %p51_p3 = por %p50_p6, %p49_p4  ;;  %s37_s29 = ssub.s32 %s2289_s19, %s2687_s21 }
  0x30   : > { %s199_s30 = sand.u32 1, %s2281_s17   ;;  %p40_p9 = scmp.eq.s32.totalorder %s37_s29, 0 }
  0x31   : > { %s1687_s5 = sshll.u32 %s199_s30, 5  ;;  %s1842_s6 = sshll.u32 %s2289_s19, 9 }
  0x32   : > { %s2442_s7 = scalar_select %p40_p9, %s2281_s17, %s42_s22  }
  0x33   : > { %s210_s10 = scalar_lea.hbm %s2661_s0, %s1842_s6  ;;  %s203_s11 = scalar_lea.vmem [#allocation6], %s1687_s5 }
  0x34   : > { %s211_s12 = sshll.u32 %s203_s11, 4  ;;  %p2449_p11 = pnand %p1937_p12, %p51_p3  ;;  %s212_s12 = int_to_ptr.vmem [resolvable:$true] %s211_s12 }
  0x35   : > { %s200_s13 = scalar_lea.sflag [#allocation7], %s199_s30  ;;  %s2190_s14 = scalar_lea.vmem %s212_s12, 512 }
  0x36   : > { %p2179_p2 = pneg %p2449_p11  ;;  %p2191_p13 = scmp.ne.s32.totalorder %s212_s12, %s2190_s14 }
  0x37   : > { %s2303_s22 = smov [#allocation6]  }
  0x38   : > { %p2193_p0 = pnand %p2191_p13, %p2179_p2  ;;  %s2195_s29 = sshll.u32 %s2303_s22, 4  ;;  %s2196_s29 = int_to_ptr.vmem [resolvable:$false] %s2195_s29 }
  0x39   : > { %s2197_s6 = scalar_lea.vmem %s2196_s29, 1024  ;;  %p2198_p10 = scmp.lt.s32.totalorder %s212_s12, %s2196_s29 }
  0x3a   : > { %p2194_p5 = pneg %p2193_p0  ;;  %p2199_p1 = scmp.lt.s32.totalorder %s2197_s6, %s2190_s14 }
  0x3c   : > { %p2200_p4 = por %p2199_p1, %p2198_p10 }
  0x3e   : > { %p2201_p6 = pnand %p2200_p4, %p2194_p5 }
  0x40   : > { %2204 = shalt.err (!%p2201_p6)
}
  0x41   : > { %s2304_s5 = smov 64   ;;  %s2305_s8 = smov 4  }
  0x42   : > { %1930 = dma.hbm_to_vmem [thread:$0]  (!%p2449_p11), %s210_s10, 512, %s212_s12, %s200_s13, %s2304_s5, %s2304_s5, %s2305_s8  }
  0x43   : > { %223 = sbr.rel (%p2392_p8) target bundleno = 722 (0x2d2), region = 36  ;;  %s2460_s30 = sand.u32 (!%p2392_p8), 1, %s2277_s16  }
  0x44   : > { %s1691_s9 = sshll.u32 (!%p2392_p8), %s2460_s30, 5  ;;  %s226_s11 = scalar_lea.sflag (!%p2392_p8), [#allocation7], %s2460_s30 }
  0x45   : > { %s2464_s14 = scalar_lea.vmem (!%p2392_p8), [#allocation6], %s1691_s9  ;;  %p2677_p12 = scmp.ne.s32.totalorder (!%p2392_p8), %s2671_s25, 0 }
  0x48   : > { %2260 = dma.done.wait (%p2677_p12), %s226_s11, 512  }
  0x49   : > { %2262 = vsyncadd (%p2677_p12), %s226_s11, 4294966784  ;;  %p2678_p3 = scmp.ne.s32.totalorder %s2669_s23, 0 }
  0x4b   : > { %2264 = dma.done.wait (%p2678_p3), [#allocation10], 8192  }
  0x4c   : > { %2266 = vsyncadd (%p2678_p3), [#allocation10], 4294959104  ;;  %s2474_s27 = scalar_lea.vmem [#allocation12], %s1691_s9  ;;  %p1695_p8 = scmp.ne.s32.totalorder %s2285_s18, 0 }
  0x4e   : > { %268 = sbr.rel (%p1695_p8) target bundleno = 85 (0x55), region = 52 }
  0x53   : > { %v2306_v0 = vmov 0.0  }
  0x54   : > { %269 = vst [vmem:[#allocation4] sm:$0xff] %v2306_v0  ;;  %270 = vst [vmem:[#allocation5] sm:$0xff] %v2306_v0 }
  0x55 PF: > { %v2009_v1 = vld [vmem:[#allocation9 + $0xe4] ss:$16 sps:$4 sm:$0xff]   ;;  %v2011_v2 = vld [vmem:[#allocation9 + $0xec] ss:$16 sps:$4 sm:$0xff]   ;;  %v2307_v3 = vmov 0   ;;  %v313_v38 = vlaneseq  ;;  %s2532_s10 = smov 0  }
  0x56   : > { %549 = vmatprep.mubr.bf16.mxu0 %v2307_v3  ;;  %622 = vmatprep.mubr.bf16.mxu1 %v2307_v3  ;;  %v2013_v4 = vld [vmem:[#allocation9 + $0xe0] ss:$16 sps:$4 sm:$0xff]   ;;  %v2014_v5 = vld [vmem:[#allocation9 + $0xe8] ss:$16 sps:$4 sm:$0xff]   ;;  %v2015_v6 = vld [vmem:[#allocation9 + $0xc4] ss:$16 sps:$4 sm:$0xff]  }
  0x57   : > { %517 = vmatprep.subr.bf16.mxu0 %v2009_v1  ;;  %590 = vmatprep.subr.bf16.mxu1 %v2011_v2  ;;  %v2017_v7 = vld [vmem:[#allocation9 + $0xcc] ss:$16 sps:$4 sm:$0xff]   ;;  %v2019_v8 = vld [vmem:[#allocation9 + $0xc0] ss:$16 sps:$4 sm:$0xff]   ;;  %v2020_v9 = vld [vmem:[#allocation9 + $0xc8] ss:$16 sps:$4 sm:$0xff]  }
  0x58   : > { %518 = vmatpush1.bf16.msra.mxu0 %v2013_v4  ;;  %591 = vmatpush1.bf16.msra.mxu1 %v2014_v5  ;;  %v2021_v10 = vld [vmem:[#allocation9 + $0xa4] ss:$16 sps:$4 sm:$0xff]   ;;  %v2023_v11 = vld [vmem:[#allocation9 + $0xac] ss:$16 sps:$4 sm:$0xff]   ;;  %v2025_v12 = vld [vmem:[#allocation9 + $0xa0] ss:$16 sps:$4 sm:$0xff]  }
  0x59   : > { %519 = vmatprep.subr.bf16.mxu0 %v2015_v6  ;;  %592 = vmatprep.subr.bf16.mxu1 %v2017_v7  ;;  %v2026_v13 = vld [vmem:[#allocation9 + $0xa8] ss:$16 sps:$4 sm:$0xff]   ;;  %v2027_v14 = vld [vmem:[#allocation9 + $0x84] ss:$16 sps:$4 sm:$0xff]   ;;  %v2029_v15 = vld [vmem:[#allocation9 + $0x8c] ss:$16 sps:$4 sm:$0xff]  }
  0x5a   : > { %v2031_v16 = vld [vmem:[#allocation9 + $0x80] ss:$16 sps:$4 sm:$0xff]   ;;  %v2032_v17 = vld [vmem:[#allocation9 + $0x88] ss:$16 sps:$4 sm:$0xff]   ;;  %v2033_v18 = vld [vmem:[#allocation9 + $0x64] ss:$16 sps:$4 sm:$0xff]  }
  0x5b   : > { %v2035_v19 = vld [vmem:[#allocation9 + $0x6c] ss:$16 sps:$4 sm:$0xff]   ;;  %v2037_v20 = vld [vmem:[#allocation9 + $0x60] ss:$16 sps:$4 sm:$0xff]   ;;  %v2038_v21 = vld [vmem:[#allocation9 + $0x68] ss:$16 sps:$4 sm:$0xff]  }
  0x5c   : > { %520 = vmatpush1.bf16.msra.mxu0 %v2019_v8  ;;  %593 = vmatpush1.bf16.msra.mxu1 %v2020_v9  ;;  %v2039_v22 = vld [vmem:[#allocation9 + $0x44] ss:$16 sps:$4 sm:$0xff]   ;;  %v2041_v23 = vld [vmem:[#allocation9 + $0x4c] ss:$16 sps:$4 sm:$0xff]   ;;  %v2043_v24 = vld [vmem:[#allocation9 + $0x40] ss:$16 sps:$4 sm:$0xff]  }
  0x5d   : > { %521 = vmatprep.subr.bf16.mxu0 %v2021_v10  ;;  %594 = vmatprep.subr.bf16.mxu1 %v2023_v11  ;;  %v2044_v25 = vld [vmem:[#allocation9 + $0x48] ss:$16 sps:$4 sm:$0xff]   ;;  %v2045_v26 = vld [vmem:[#allocation9 + $0x24] ss:$16 sps:$4 sm:$0xff]   ;;  %v2047_v27 = vld [vmem:[#allocation9 + $0x2c] ss:$16 sps:$4 sm:$0xff]  }
  0x5e   : > { %v2049_v28 = vld [vmem:[#allocation9 + $0x20] ss:$16 sps:$4 sm:$0xff]   ;;  %v2050_v29 = vld [vmem:[#allocation9 + $0x28] ss:$16 sps:$4 sm:$0xff]   ;;  %v2051_v30 = vld [vmem:[#allocation9 + $0x4] ss:$16 sps:$4 sm:$0xff]  }
  0x5f   : > { %v2053_v31 = vld [vmem:[#allocation9 + $0xc] ss:$16 sps:$4 sm:$0xff]   ;;  %v2055_v32 = vld [vmem:[#allocation9] ss:$16 sps:$4 sm:$0xff]   ;;  %v2056_v33 = vld [vmem:[#allocation9 + $0x8] ss:$16 sps:$4 sm:$0xff]  }
  0x60   : > { %522 = vmatpush1.bf16.msra.mxu0 %v2025_v12  ;;  %595 = vmatpush1.bf16.msra.mxu1 %v2026_v13  ;;  %v2057_v34 = vld [vmem:[%s2464_s14] sm:$0xff]   ;;  %v2058_v35 = vld [vmem:[%s2464_s14 + $0x8] sm:$0xff]   ;;  %v2059_v36 = vld [vmem:[%s2464_s14 + $0x10] sm:$0xff]   ;;  %v314_v39 = vshrl.u32 %v313_v38, 7 }
  0x61   : > { %523 = vmatprep.subr.bf16.mxu0 %v2027_v14  ;;  %596 = vmatprep.subr.bf16.mxu1 %v2029_v15  ;;  %v2060_v37 = vld [vmem:[%s2464_s14 + $0x18] sm:$0xff]   ;;  %v311_v42 = vld [vmem:[%s2664_s3] sm:$0xf] }
  0x62   : > { %v315_v40 = vsub.s32 0, %v314_v39  ;;  %v323_v41 = vsub.s32 2, %v314_v39  ;;  %v319_v43 = vsub.s32 1, %v314_v39  ;;  %v327_v44 = vsub.s32 3, %v314_v39 }
  0x64   : > { %524 = vmatpush1.bf16.msra.mxu0 %v2031_v16  ;;  %597 = vmatpush1.bf16.msra.mxu1 %v2032_v17  ;;  %v2492_v45 = vrot.slane %v311_v42, %v315_v40  ;;  %v2494_v46 = vrot.slane %v311_v42, %v323_v41  ;;  %v2496_v47 = vrot.slane %v311_v42, %v319_v43 }
  0x65   : > { %525 = vmatprep.subr.bf16.mxu0 %v2033_v18  ;;  %598 = vmatprep.subr.bf16.mxu1 %v2035_v19  ;;  %v2498_v48 = vrot.slane %v311_v42, %v327_v44 }
  0x68   : > { %526 = vmatpush1.bf16.msra.mxu0 %v2037_v20  ;;  %599 = vmatpush1.bf16.msra.mxu1 %v2038_v21 }
  0x69   : > { %527 = vmatprep.subr.bf16.mxu0 %v2039_v22  ;;  %600 = vmatprep.subr.bf16.mxu1 %v2041_v23 }
  0x6c   : > { %528 = vmatpush1.bf16.msra.mxu0 %v2043_v24  ;;  %601 = vmatpush1.bf16.msra.mxu1 %v2044_v25 }
  0x6d   : > { %529 = vmatprep.subr.bf16.mxu0 %v2045_v26  ;;  %602 = vmatprep.subr.bf16.mxu1 %v2047_v27 }
  0x70   : > { %530 = vmatpush1.bf16.msra.mxu0 %v2049_v28  ;;  %603 = vmatpush1.bf16.msra.mxu1 %v2050_v29 }
  0x71   : > { %531 = vmatprep.subr.bf16.mxu0 %v2051_v30  ;;  %604 = vmatprep.subr.bf16.mxu1 %v2053_v31 }
  0x74   : > { %532 = vmatpush1.bf16.msra.mxu0 %v2055_v32  ;;  %605 = vmatpush1.bf16.msra.mxu1 %v2056_v33 }
  0x77   : > { %550 = vmatmul.mubr.bf16.vlgmr.msra.gmra.mxu0 %v2057_v34  ;;  %623 = vmatmul.mubr.bf16.vlgmr.msra.gmra.mxu1 %v2057_v34 }
  0x78   : > { %559 = vmatprep.mubr.bf16.mxu0 %v2307_v3  ;;  %632 = vmatprep.mubr.bf16.mxu1 %v2307_v3 }
  0x7f   : > { %560 = vmatmul.mubr.bf16.gmra.mxu0 %v2058_v35  ;;  %633 = vmatmul.mubr.bf16.gmra.mxu1 %v2058_v35 }
  0x80   : > { %569 = vmatprep.mubr.bf16.mxu0 %v2307_v3  ;;  %642 = vmatprep.mubr.bf16.mxu1 %v2307_v3 }
  0x87   : > { %570 = vmatmul.mubr.bf16.gmra.mxu0 %v2059_v36  ;;  %643 = vmatmul.mubr.bf16.gmra.mxu1 %v2059_v36 }
  0x88   : > { %579 = vmatprep.mubr.bf16.mxu0 %v2307_v3  ;;  %652 = vmatprep.mubr.bf16.mxu1 %v2307_v3 }
  0x8f   : > { %580 = vmatmul.mubr.bf16.gmra.mxu0 %v2060_v37  ;;  %653 = vmatmul.mubr.bf16.gmra.mxu1 %v2060_v37 }
 0x137   : > { %v551_v49 = vpop.f32.mrf.mxu0  ;;  %v624_v50 = vpop.f32.mrf.mxu1 }
 0x138   : > { %v552_v51 = vadd.f32 %v551_v49, %v2492_v45  ;;  %v625_v52 = vadd.f32 %v624_v50, %v2494_v46 }
 0x139   : > { %v553_v53 = vpop.f32.mrf.mxu0  ;;  %v626_v54 = vpop.f32.mrf.mxu1 }
 0x13a   : > { %663 = vst [vmem:[#allocation2] sm:$0xff] %v552_v51  ;;  %665 = vst [vmem:[#allocation2 + $0x10] sm:$0xff] %v625_v52  ;;  %v554_v55 = vadd.f32 %v553_v53, %v2496_v47  ;;  %v627_v56 = vadd.f32 %v626_v54, %v2498_v48 }
 0x13b   : > { %v555_v57 = vpop.f32.mrf.mxu0  ;;  %v628_v58 = vpop.f32.mrf.mxu1 }
 0x13c   : > { %664 = vst [vmem:[#allocation2 + $0x8] sm:$0xff] %v554_v55  ;;  %666 = vst [vmem:[#allocation2 + $0x18] sm:$0xff] %v627_v56  ;;  %v556_v59 = vadd.f32 %v555_v57, %v2492_v45  ;;  %v629_v60 = vadd.f32 %v628_v58, %v2494_v46 }
 0x13d   : > { %v557_v61 = vpop.f32.mrf.mxu0  ;;  %v630_v62 = vpop.f32.mrf.mxu1 }
 0x13e   : > { %667 = vst [vmem:[#allocation2 + $0x20] sm:$0xff] %v556_v59  ;;  %669 = vst [vmem:[#allocation2 + $0x30] sm:$0xff] %v629_v60  ;;  %v558_v63 = vadd.f32 %v557_v61, %v2496_v47  ;;  %v631_v0 = vadd.f32 %v630_v62, %v2498_v48 }
 0x13f   : > { %v561_v1 = vpop.f32.mrf.mxu0  ;;  %v634_v2 = vpop.f32.mrf.mxu1 }
 0x140   : > { %668 = vst [vmem:[#allocation2 + $0x28] sm:$0xff] %v558_v63  ;;  %670 = vst [vmem:[#allocation2 + $0x38] sm:$0xff] %v631_v0  ;;  %v562_v3 = vadd.f32 %v561_v1, %v2492_v45  ;;  %v635_v4 = vadd.f32 %v634_v2, %v2494_v46 }
 0x141   : > { %v563_v5 = vpop.f32.mrf.mxu0  ;;  %v636_v6 = vpop.f32.mrf.mxu1 }
 0x142   : > { %671 = vst [vmem:[#allocation2 + $0x40] sm:$0xff] %v562_v3  ;;  %673 = vst [vmem:[#allocation2 + $0x50] sm:$0xff] %v635_v4  ;;  %v564_v7 = vadd.f32 %v563_v5, %v2496_v47  ;;  %v637_v8 = vadd.f32 %v636_v6, %v2498_v48 }
 0x143   : > { %v565_v9 = vpop.f32.mrf.mxu0  ;;  %v638_v10 = vpop.f32.mrf.mxu1 }
 0x144   : > { %672 = vst [vmem:[#allocation2 + $0x48] sm:$0xff] %v564_v7  ;;  %674 = vst [vmem:[#allocation2 + $0x58] sm:$0xff] %v637_v8  ;;  %v566_v11 = vadd.f32 %v565_v9, %v2492_v45  ;;  %v639_v12 = vadd.f32 %v638_v10, %v2494_v46 }
 0x145   : > { %v567_v13 = vpop.f32.mrf.mxu0  ;;  %v640_v14 = vpop.f32.mrf.mxu1 }
 0x146   : > { %675 = vst [vmem:[#allocation2 + $0x60] sm:$0xff] %v566_v11  ;;  %677 = vst [vmem:[#allocation2 + $0x70] sm:$0xff] %v639_v12  ;;  %v568_v15 = vadd.f32 %v567_v13, %v2496_v47  ;;  %v641_v16 = vadd.f32 %v640_v14, %v2498_v48 }
 0x147   : > { %v571_v17 = vpop.f32.mrf.mxu0  ;;  %v644_v18 = vpop.f32.mrf.mxu1 }
 0x148   : > { %676 = vst [vmem:[#allocation2 + $0x68] sm:$0xff] %v568_v15  ;;  %678 = vst [vmem:[#allocation2 + $0x78] sm:$0xff] %v641_v16  ;;  %v572_v19 = vadd.f32 %v571_v17, %v2492_v45  ;;  %v645_v20 = vadd.f32 %v644_v18, %v2494_v46 }
 0x149   : > { %v573_v21 = vpop.f32.mrf.mxu0  ;;  %v646_v22 = vpop.f32.mrf.mxu1 }
 0x14a   : > { %679 = vst [vmem:[#allocation2 + $0x80] sm:$0xff] %v572_v19  ;;  %681 = vst [vmem:[#allocation2 + $0x90] sm:$0xff] %v645_v20  ;;  %v574_v23 = vadd.f32 %v573_v21, %v2496_v47  ;;  %v647_v24 = vadd.f32 %v646_v22, %v2498_v48 }
 0x14b   : > { %v575_v25 = vpop.f32.mrf.mxu0  ;;  %v648_v26 = vpop.f32.mrf.mxu1 }
 0x14c   : > { %680 = vst [vmem:[#allocation2 + $0x88] sm:$0xff] %v574_v23  ;;  %682 = vst [vmem:[#allocation2 + $0x98] sm:$0xff] %v647_v24  ;;  %v576_v27 = vadd.f32 %v575_v25, %v2492_v45  ;;  %v649_v28 = vadd.f32 %v648_v26, %v2494_v46 }
 0x14d   : > { %v577_v29 = vpop.f32.mrf.mxu0  ;;  %v650_v30 = vpop.f32.mrf.mxu1 }
 0x14e   : > { %683 = vst [vmem:[#allocation2 + $0xa0] sm:$0xff] %v576_v27  ;;  %685 = vst [vmem:[#allocation2 + $0xb0] sm:$0xff] %v649_v28  ;;  %v578_v31 = vadd.f32 %v577_v29, %v2496_v47  ;;  %v651_v32 = vadd.f32 %v650_v30, %v2498_v48 }
 0x14f   : > { %v581_v33 = vpop.f32.mrf.mxu0  ;;  %v654_v34 = vpop.f32.mrf.mxu1 }
 0x150   : > { %684 = vst [vmem:[#allocation2 + $0xa8] sm:$0xff] %v578_v31  ;;  %686 = vst [vmem:[#allocation2 + $0xb8] sm:$0xff] %v651_v32  ;;  %v582_v35 = vadd.f32 %v581_v33, %v2492_v45  ;;  %v655_v36 = vadd.f32 %v654_v34, %v2494_v46 }
 0x151   : > { %v583_v37 = vpop.f32.mrf.mxu0  ;;  %v656_v38 = vpop.f32.mrf.mxu1 }
 0x152   : > { %687 = vst [vmem:[#allocation2 + $0xc0] sm:$0xff] %v582_v35  ;;  %689 = vst [vmem:[#allocation2 + $0xd0] sm:$0xff] %v655_v36  ;;  %v584_v39 = vadd.f32 %v583_v37, %v2496_v47  ;;  %v657_v40 = vadd.f32 %v656_v38, %v2498_v48 }
 0x153   : > { %v585_v41 = vpop.f32.mrf.mxu0  ;;  %v658_v42 = vpop.f32.mrf.mxu1 }
 0x154   : > { %688 = vst [vmem:[#allocation2 + $0xc8] sm:$0xff] %v584_v39  ;;  %690 = vst [vmem:[#allocation2 + $0xd8] sm:$0xff] %v657_v40  ;;  %v586_v43 = vadd.f32 %v585_v41, %v2492_v45  ;;  %v659_v44 = vadd.f32 %v658_v42, %v2494_v46 }
 0x155   : > { %v587_v49 = vpop.f32.mrf.mxu0  ;;  %v660_v50 = vpop.f32.mrf.mxu1 }
 0x156   : > { %691 = vst [vmem:[#allocation2 + $0xe0] sm:$0xff] %v586_v43  ;;  %693 = vst [vmem:[#allocation2 + $0xf0] sm:$0xff] %v659_v44  ;;  %v588_v51 = vadd.f32 %v587_v49, %v2496_v47  ;;  %v661_v52 = vadd.f32 %v660_v50, %v2498_v48 }
 0x158   : > { %692 = vst [vmem:[#allocation2 + $0xe8] sm:$0xff] %v588_v51  ;;  %694 = vst [vmem:[#allocation2 + $0xf8] sm:$0xff] %v661_v52 }
 0x159 LB: >> { %v2061_v45 = vld [vmem:[#allocation11 + $0xe4] ss:$16 sps:$4 sm:$0xff]   ;;  %v2063_v53 = vld [vmem:[#allocation11 + $0xe0] ss:$16 sps:$4 sm:$0xff]   ;;  %v2308_v46 = vmov 0   ;;  %s1843_s12 = sshll.u32 %s2297_s10, 5  ;;  %s2297_s10 = sphi %s2532_s10, %s700_s10  }
 0x15a   : >> { %934 = vmatprep.mubr.bf16.mxu0 %v2308_v46  ;;  %975 = vmatprep.mubr.bf16.mxu1 %v2308_v46  ;;  %v2064_v54 = vld [vmem:[#allocation11 + $0xc4] ss:$16 sps:$4 sm:$0xff]   ;;  %v2066_v47 = vld [vmem:[#allocation11 + $0xc0] ss:$16 sps:$4 sm:$0xff]   ;;  %v2072_v55 = vld [vmem:[#allocation11 + $0xec] ss:$16 sps:$4 sm:$0xff]  }
 0x15b   : >> { %902 = vmatprep.subr.bf16.mxu0 %v2061_v45  ;;  %v2067_v48 = vld [vmem:[#allocation11 + $0xa4] ss:$16 sps:$4 sm:$0xff]   ;;  %v2075_v56 = vld [vmem:[#allocation11 + $0xe8] ss:$16 sps:$4 sm:$0xff]   ;;  %v2069_v57 = vld [vmem:[#allocation11 + $0xa0] ss:$16 sps:$4 sm:$0xff]   ;;  %943 = vmatprep.subr.bf16.mxu1 %v2072_v55 }
 0x15c   : >> { %903 = vmatpush1.bf16.msra.mxu0 %v2063_v53  ;;  %v2070_v58 = vld [vmem:[#allocation11 + $0x84] ss:$16 sps:$4 sm:$0xff]   ;;  %944 = vmatpush1.bf16.msra.mxu1 %v2075_v56  ;;  %v2078_v59 = vld [vmem:[#allocation11 + $0xcc] ss:$16 sps:$4 sm:$0xff]   ;;  %v2081_v60 = vld [vmem:[#allocation11 + $0xc8] ss:$16 sps:$4 sm:$0xff]  }
 0x15d   : >> { %904 = vmatprep.subr.bf16.mxu0 %v2064_v54  ;;  %945 = vmatprep.subr.bf16.mxu1 %v2078_v59  ;;  %v2074_v61 = vld [vmem:[#allocation11 + $0x80] ss:$16 sps:$4 sm:$0xff]   ;;  %v2076_v62 = vld [vmem:[#allocation11 + $0x64] ss:$16 sps:$4 sm:$0xff]   ;;  %v2084_v63 = vld [vmem:[#allocation11 + $0xac] ss:$16 sps:$4 sm:$0xff]  }
 0x15e   : >> { %v2087_v0 = vld [vmem:[#allocation11 + $0xa8] ss:$16 sps:$4 sm:$0xff]   ;;  %v2090_v1 = vld [vmem:[#allocation11 + $0x8c] ss:$16 sps:$4 sm:$0xff]   ;;  %v2080_v2 = vld [vmem:[#allocation11 + $0x60] ss:$16 sps:$4 sm:$0xff]  }
 0x15f   : >> { %v2082_v3 = vld [vmem:[#allocation11 + $0x44] ss:$16 sps:$4 sm:$0xff]   ;;  %v2093_v4 = vld [vmem:[#allocation11 + $0x88] ss:$16 sps:$4 sm:$0xff]   ;;  %v2096_v5 = vld [vmem:[#allocation11 + $0x6c] ss:$16 sps:$4 sm:$0xff]  }
 0x160   : >> { %905 = vmatpush1.bf16.msra.mxu0 %v2066_v47  ;;  %946 = vmatpush1.bf16.msra.mxu1 %v2081_v60  ;;  %v2086_v6 = vld [vmem:[#allocation11 + $0x40] ss:$16 sps:$4 sm:$0xff]   ;;  %v2088_v7 = vld [vmem:[#allocation11 + $0x24] ss:$16 sps:$4 sm:$0xff]   ;;  %v2099_v8 = vld [vmem:[#allocation11 + $0x68] ss:$16 sps:$4 sm:$0xff]  }
 0x161   : >> { %906 = vmatprep.subr.bf16.mxu0 %v2067_v48  ;;  %947 = vmatprep.subr.bf16.mxu1 %v2084_v63  ;;  %v2100_v9 = vld [vmem:[#allocation11 + $0x4c] ss:$16 sps:$4 sm:$0xff]   ;;  %v2092_v10 = vld [vmem:[#allocation11 + $0x20] ss:$16 sps:$4 sm:$0xff]   ;;  %v2094_v11 = vld [vmem:[#allocation11 + $0x4] ss:$16 sps:$4 sm:$0xff]  }
 0x162   : >> { %v2102_v12 = vld [vmem:[#allocation11 + $0x48] ss:$16 sps:$4 sm:$0xff]   ;;  %v2103_v13 = vld [vmem:[#allocation11 + $0x2c] ss:$16 sps:$4 sm:$0xff]   ;;  %v2098_v14 = vld [vmem:[#allocation11] ss:$16 sps:$4 sm:$0xff]  }
 0x163   : >> { %v708_v15 = vld [vmem:[#allocation4] sm:$0xff]  ;;  %v2105_v16 = vld [vmem:[#allocation11 + $0x28] ss:$16 sps:$4 sm:$0xff]   ;;  %v2106_v17 = vld [vmem:[#allocation11 + $0xc] ss:$16 sps:$4 sm:$0xff]   ;;  %s703_s24 = scalar_lea.vmem [#allocation2], %s1843_s12 }
 0x164   : >> { %907 = vmatpush1.bf16.msra.mxu0 %v2069_v57  ;;  %948 = vmatpush1.bf16.msra.mxu1 %v2087_v0  ;;  %v709_v18 = vpack.c.bf16 %v708_v15, %v708_v15  ;;  %v2108_v19 = vld [vmem:[#allocation11 + $0x8] ss:$16 sps:$4 sm:$0xff]   ;;  %v704_v20 = vld [vmem:[%s703_s24] sm:$0xff]  ;;  %v706_v39 = vld [vmem:[%s703_s24 + $0x10] sm:$0xff]  ;;  %s1766_s13 = sshll.u32 %s2297_s10, 3  ;;  %s700_s10 = sadd.s32 1, %s2297_s10  }
 0x165   : >> { %908 = vmatprep.subr.bf16.mxu0 %v2070_v58  ;;  %949 = vmatprep.subr.bf16.mxu1 %v2090_v1  ;;  %v705_v22 = vld [vmem:[%s703_s24 + $0x8] sm:$0xff]  ;;  %v707_v33 = vld [vmem:[%s703_s24 + $0x18] sm:$0xff]  ;;  %s1016_s22 = scalar_lea.vmem [#allocation3], %s1766_s13  ;;  %p697_p9 = scmp.ge.s32.totalorder %s700_s10, 8  }
 0x166   : >> { %v1007_v52 = vld [vmem:[#allocation5] sm:$0xff]  ;;  %vm1067_vm0 = vcmask (%p697_p9), 1041409   ;;  %vm1070_vm1 = vcmask (%p697_p9), 1042434   ;;  %vm1073_vm2 = vcmask (%p697_p9), 1043459   ;;  %vm1076_vm3 = vcmask (%p697_p9), 1044484   ;;  %s1839_s29 = sshll.u32 (%p697_p9), %s2285_s18, 6 }
 0x167   : > { %vm1079_vm4 = vcmask (%p697_p9), 1045509   ;;  %vm1082_vm5 = vcmask (%p697_p9), 1046534   ;;  %vm1085_vm6 = vcmask (%p697_p9), 1047559   ;;  %s1568_s6 = sshll.u32 (%p697_p9), %s2474_s27, 4  ;;  %s2609_s9 = scalar_lea.hbm (%p697_p9), %s2665_s4, %s1839_s29  ;;  %s2612_s6 = int_to_ptr.vmem [resolvable:$true] %s1568_s6 }
 0x168   : >> { %909 = vmatpush1.bf16.msra.mxu0 %v2074_v61  ;;  %950 = vmatpush1.bf16.msra.mxu1 %v2093_v4  ;;  %s1553_s18 = scalar_lea.sflag (%p697_p9), [#allocation8], %s2460_s30  ;;  %s2205_s11 = scalar_lea.vmem (%p697_p9), %s2612_s6, 512 }
 0x169   : >> { %910 = vmatprep.subr.bf16.mxu0 %v2076_v62  ;;  %951 = vmatprep.subr.bf16.mxu1 %v2096_v5  ;;  %p2206_p11 = scmp.ne.s32.totalorder (%p697_p9), %s2612_s6, %s2205_s11  ;;  %s2309_s14 = smov (%p697_p9), [#allocation12]  }
 0x16a   : > { %s2209_s23 = sshll.u32 (%p697_p9), %s2309_s14, 4  ;;  %s2210_s23 = int_to_ptr.vmem [resolvable:$false] %s2209_s23 }
 0x16b   : > { %p2207_p2 = pnand (%p697_p9), %p2206_p11, %p2433_p7  ;;  %s2211_s25 = scalar_lea.vmem (%p697_p9), %s2210_s23, 1024 }
 0x16c   : >> { %911 = vmatpush1.bf16.msra.mxu0 %v2080_v2  ;;  %952 = vmatpush1.bf16.msra.mxu1 %v2099_v8  ;;  %p2212_p0 = scmp.lt.s32.totalorder (%p697_p9), %s2612_s6, %s2210_s23  ;;  %p2213_p5 = scmp.lt.s32.totalorder (%p697_p9), %s2211_s25, %s2205_s11 }
 0x16d   : >> { %912 = vmatprep.subr.bf16.mxu0 %v2082_v3  ;;  %953 = vmatprep.subr.bf16.mxu1 %v2100_v9  ;;  %p2208_p13 = pneg (%p697_p9), %p2207_p2 }
 0x16e   : > { %p2214_p10 = por (%p697_p9), %p2213_p5, %p2212_p0 }
 0x170   : >> { %913 = vmatpush1.bf16.msra.mxu0 %v2086_v6  ;;  %954 = vmatpush1.bf16.msra.mxu1 %v2102_v12  ;;  %p2215_p1 = pnand (%p697_p9), %p2214_p10, %p2208_p13 }
 0x171   : >> { %914 = vmatprep.subr.bf16.mxu0 %v2088_v7  ;;  %955 = vmatprep.subr.bf16.mxu1 %v2103_v13 }
 0x174   : >> { %915 = vmatpush1.bf16.msra.mxu0 %v2092_v10  ;;  %956 = vmatpush1.bf16.msra.mxu1 %v2105_v16 }
 0x175   : >> { %916 = vmatprep.subr.bf16.mxu0 %v2094_v11  ;;  %957 = vmatprep.subr.bf16.mxu1 %v2106_v17 }
 0x178   : >> { %917 = vmatpush1.bf16.msra.mxu0 %v2098_v14  ;;  %958 = vmatpush1.bf16.msra.mxu1 %v2108_v19 }
 0x17b   : >> { %935 = vmatmul.mubr.bf16.vlgmr.msra.gmra.mxu0 %v709_v18  ;;  %976 = vmatmul.mubr.bf16.vlgmr.msra.gmra.mxu1 %v709_v18 }
 0x23b   : >> { %v936_v21 = vpop.f32.mrf.mxu0  ;;  %v977_v30 = vpop.f32.mrf.mxu1 }
 0x23c   : >> { %v984_v23 = vadd.f32 %v936_v21, %v704_v20  ;;  %v986_v42 = vadd.f32 %v977_v30, %v706_v39 }
 0x23d   : >> { %v938_v24 = vpop.f32.mrf.mxu0  ;;  %v979_v34 = vpop.f32.mrf.mxu1 }
 0x23e   : >> { %v988_v25 = vsub.f32 0.0, %v984_v23  ;;  %v985_v26 = vadd.f32 %v938_v24, %v705_v22  ;;  %v987_v36 = vadd.f32 %v979_v34, %v707_v33 }
 0x23f   : >> { %v940_v27 = vpop.f32.mrf.mxu0  ;;  %v981_v35 = vpop.f32.mrf.mxu1 }
 0x240   : >> { %v989_v28 = vmul.f32 1.442695, %v988_v25  ;;  %v994_v29 = vsub.f32 0.0, %v985_v26  ;;  %v1001_v38 = vsub.f32 0.0, %v987_v36 }
 0x241   : >> { %v941_v31 = vpop.f32.mrf.mxu0  ;;  %v982_v37 = vpop.f32.mrf.mxu1 }
 0x242   : >> { %2109 = vpow2.f32 %v989_v28  ;;  %v995_v32 = vmul.f32 1.442695, %v994_v29  ;;  %v1002_v40 = vmul.f32 1.442695, %v1001_v38 }
 0x244   : >> { %2111 = vpow2.f32 %v995_v32 }
 0x245   : >> { %2113 = vpow2.f32 %v1002_v40 }
 0x24f   : >> { %v2110_v41 = vpop.eup %2109 }
 0x250   : >> { %v991_v43 = vadd.f32 1.0, %v2110_v41 }
 0x251   : >> { %v2112_v44 = vpop.eup %2111 }
 0x252   : >> { %2115 = vrcp.f32 %v991_v43  ;;  %v997_v49 = vadd.f32 1.0, %v2112_v44  ;;  %v2114_v50 = vpop.eup %2113 }
 0x253   : >> { %2117 = vtanh.f32 %v986_v42  ;;  %v1004_v46 = vadd.f32 1.0, %v2114_v50 }
 0x254   : >> { %2119 = vrcp.f32 %v997_v49 }
 0x255   : >> { %2121 = vrcp.f32 %v1004_v46 }
 0x25f   : >> { %v2116_v51 = vpop.eup %2115 }
 0x260   : >> { %v2118_v45 = vpop.eup %2117 }
 0x261   : >> { %v2120_v53 = vpop.eup %2119  ;;  %v1009_v47 = vmul.f32 %v2118_v45, %v2116_v51 }
 0x262   : >> { %v1008_v54 = vmul.f32 %v2120_v53, %v1007_v52  ;;  %v2122_v55 = vpop.eup %2121 }
 0x264   : >> { %v1010_v48 = vadd.f32 %v1009_v47, %v1008_v54 }
 0x266   : >> { %2123 = vtanh.f32 %v1010_v48  ;;  %1013 = vst [vmem:[#allocation5] sm:$0xff] %v1010_v48 }
 0x272   : > { %699 = sbr.rel (!%p697_p9) target bundleno = 345 (0x159), region = 109 }
 0x273   : >> { %v2124_v56 = vpop.eup %2123 }
 0x274   : >> { %v1012_v57 = vmul.f32 %v2124_v56, %v2122_v55 }
 0x276   : >> { %1014 = vst [vmem:[#allocation4] sm:$0xff] %v1012_v57  ;;  %1017 = vst [vmem:[%s1016_s22] sm:$0xff] %v1012_v57 }
 0x27d   : > { %v1018_v58 = vld [vmem:[#allocation3] sm:$0x1]  ;;  %v1019_v59 = vld [vmem:[#allocation3 + $0x8] sm:$0x1]  ;;  %v1020_v60 = vld [vmem:[#allocation3 + $0x10] sm:$0x1] }
 0x27e   : > { %v1021_v61 = vld [vmem:[#allocation3 + $0x18] sm:$0x1]  ;;  %v1022_v62 = vld [vmem:[#allocation3 + $0x20] sm:$0x1]  ;;  %v1023_v63 = vld [vmem:[#allocation3 + $0x28] sm:$0x1]  ;;  %v1844_v0 = vpack.c.bf16 %v1018_v58, %v1018_v58  ;;  %v1845_v1 = vpack.c.bf16 %v1019_v59, %v1019_v59  ;;  %v1846_v2 = vpack.c.bf16 %v1020_v60, %v1020_v60 }
 0x27f   : > { %v1024_v3 = vld [vmem:[#allocation3 + $0x30] sm:$0x1]  ;;  %v1025_v4 = vld [vmem:[#allocation3 + $0x38] sm:$0x1]  ;;  %v1847_v5 = vpack.c.bf16 %v1021_v61, %v1021_v61  ;;  %v1848_v6 = vpack.c.bf16 %v1022_v62, %v1022_v62  ;;  %v1849_v7 = vpack.c.bf16 %v1023_v63, %v1023_v63  ;;  %v1090_v16 = vld [vmem:[#allocation3 + $0x1] sm:$0x1] }
 0x280   : > { %v1850_v8 = vpack.c.bf16 %v1024_v3, %v1024_v3  ;;  %v1851_v9 = vpack.c.bf16 %v1025_v4, %v1025_v4  ;;  %v1058_v10 = vunpack.c.l.b16 %v1844_v0  ;;  %v1059_v11 = vunpack.c.l.b16 %v1845_v1  ;;  %v1091_v17 = vld [vmem:[#allocation3 + $0x9] sm:$0x1]  ;;  %v1092_v21 = vld [vmem:[#allocation3 + $0x11] sm:$0x1]  ;;  %v1093_v22 = vld [vmem:[#allocation3 + $0x19] sm:$0x1] }
 0x281   : > { %v1060_v12 = vunpack.c.l.b16 %v1846_v2  ;;  %v1061_v13 = vunpack.c.l.b16 %v1847_v5  ;;  %v1062_v14 = vunpack.c.l.b16 %v1848_v6  ;;  %v1063_v15 = vunpack.c.l.b16 %v1849_v7  ;;  %v1094_v23 = vld [vmem:[#allocation3 + $0x21] sm:$0x1]  ;;  %v1095_v27 = vld [vmem:[#allocation3 + $0x29] sm:$0x1]  ;;  %v1096_v30 = vld [vmem:[#allocation3 + $0x31] sm:$0x1] }
 0x282   : > { %v1064_v18 = vunpack.c.l.b16 %v1850_v8  ;;  %v1065_v19 = vunpack.c.l.b16 %v1851_v9  ;;  %v1066_v20 = vrot.slane %v1059_v11, 7  ;;  %v1097_v34 = vld [vmem:[#allocation3 + $0x39] sm:$0x1]  ;;  %v1852_v36 = vpack.c.bf16 %v1090_v16, %v1090_v16  ;;  %v1156_v53 = vld [vmem:[#allocation3 + $0x2] sm:$0x1] }
 0x283   : > { %v1069_v24 = vrot.slane %v1060_v12, 6  ;;  %v1072_v25 = vrot.slane %v1061_v13, 5  ;;  %v1075_v26 = vrot.slane %v1062_v14, 4  ;;  %v1078_v29 = vrot.slane %v1063_v15, 3  ;;  %v1157_v55 = vld [vmem:[#allocation3 + $0xa] sm:$0x1] }
 0x284   : > { %v1068_v28 = vsel %vm1067_vm0, %v1066_v20, %v1058_v10  ;;  %v1081_v32 = vrot.slane %v1064_v18, 2  ;;  %v1084_v33 = vrot.slane %v1065_v19, 1  ;;  %v1853_v37 = vpack.c.bf16 %v1091_v17, %v1091_v17  ;;  %v1158_v56 = vld [vmem:[#allocation3 + $0x12] sm:$0x1]  ;;  %v1159_v57 = vld [vmem:[#allocation3 + $0x1a] sm:$0x1] }
 0x285   : > { %v1071_v31 = vsel %vm1070_vm1, %v1069_v24, %v1068_v28  ;;  %v1854_v39 = vpack.c.bf16 %v1092_v21, %v1092_v21  ;;  %v1855_v40 = vpack.c.bf16 %v1093_v22, %v1093_v22  ;;  %v1856_v41 = vpack.c.bf16 %v1094_v23, %v1094_v23  ;;  %v1160_v62 = vld [vmem:[#allocation3 + $0x22] sm:$0x1]  ;;  %v1161_v63 = vld [vmem:[#allocation3 + $0x2a] sm:$0x1]  ;;  %v1162_v4 = vld [vmem:[#allocation3 + $0x32] sm:$0x1] }
 0x286   : > { %v1074_v35 = vsel %vm1073_vm2, %v1072_v25, %v1071_v31  ;;  %v1857_v43 = vpack.c.bf16 %v1095_v27, %v1095_v27  ;;  %v1858_v44 = vpack.c.bf16 %v1096_v30, %v1096_v30  ;;  %v1859_v49 = vpack.c.bf16 %v1097_v34, %v1097_v34  ;;  %v1163_v8 = vld [vmem:[#allocation3 + $0x3a] sm:$0x1]  ;;  %v1223_v27 = vld [vmem:[#allocation3 + $0xb] sm:$0x1]  ;;  %v1224_v28 = vld [vmem:[#allocation3 + $0x13] sm:$0x1] }
 0x287   : > { %v1077_v38 = vsel %vm1076_vm3, %v1075_v26, %v1074_v35  ;;  %v1130_v51 = vunpack.c.l.b16 %v1852_v36  ;;  %v1131_v52 = vunpack.c.l.b16 %v1853_v37  ;;  %v1132_v45 = vunpack.c.l.b16 %v1854_v39  ;;  %v1222_v26 = vld [vmem:[#allocation3 + $0x3] sm:$0x1]  ;;  %v1227_v35 = vld [vmem:[#allocation3 + $0x2b] sm:$0x1] }
 0x288   : > { %v1080_v42 = vsel %vm1079_vm4, %v1078_v29, %v1077_v38  ;;  %v1133_v54 = vunpack.c.l.b16 %v1855_v40  ;;  %v1134_v47 = vunpack.c.l.b16 %v1856_v41  ;;  %v1135_v48 = vunpack.c.l.b16 %v1857_v43  ;;  %v1226_v34 = vld [vmem:[#allocation3 + $0x23] sm:$0x1]  ;;  %v1228_v40 = vld [vmem:[#allocation3 + $0x33] sm:$0x1] }
 0x289   : > { %v1083_v50 = vsel %vm1082_vm5, %v1081_v32, %v1080_v42  ;;  %v1136_v59 = vunpack.c.l.b16 %v1858_v44  ;;  %v1137_v60 = vunpack.c.l.b16 %v1859_v49  ;;  %v1138_v61 = vrot.slane %v1131_v52, 7  ;;  %v1229_v49 = vld [vmem:[#allocation3 + $0x3b] sm:$0x1] }
 0x28a   : > { %v1086_v46 = vsel %vm1085_vm6, %v1084_v33, %v1083_v50  ;;  %v1140_v0 = vrot.slane %v1132_v45, 6  ;;  %v1142_v1 = vrot.slane %v1133_v54, 5  ;;  %v1144_v2 = vrot.slane %v1134_v47, 4  ;;  %v1225_v33 = vld [vmem:[#allocation3 + $0x1b] sm:$0x1] }
 0x28b   : > { %v1087_v58 = vpack.c.b16 %v1086_v46, %v1086_v46  ;;  %v1146_v3 = vrot.slane %v1135_v48, 3  ;;  %v1139_v5 = vsel %vm1067_vm0, %v1138_v61, %v1130_v51  ;;  %v1148_v6 = vrot.slane %v1136_v59, 2 }
 0x28c   : > { %v1150_v7 = vrot.slane %v1137_v60, 1  ;;  %v1860_v9 = vpack.c.bf16 %v1156_v53, %v1156_v53  ;;  %v1141_v10 = vsel %vm1070_vm1, %v1140_v0, %v1139_v5  ;;  %v1861_v11 = vpack.c.bf16 %v1157_v55, %v1157_v55 }
 0x28d   : > { %1089 = vst [vmem:[%s2474_s27] sm:$0xf] %v1087_v58  ;;  %v1862_v12 = vpack.c.bf16 %v1158_v56, %v1158_v56  ;;  %v1863_v13 = vpack.c.bf16 %v1159_v57, %v1159_v57  ;;  %v1143_v14 = vsel %vm1073_vm2, %v1142_v1, %v1141_v10  ;;  %v1864_v15 = vpack.c.bf16 %v1160_v62, %v1160_v62  ;;  %v1292_v10 = vld [vmem:[#allocation3 + $0x24] sm:$0x1] }
 0x28e   : > { %v1865_v16 = vpack.c.bf16 %v1161_v63, %v1161_v63  ;;  %v1866_v17 = vpack.c.bf16 %v1162_v4, %v1162_v4  ;;  %v1145_v18 = vsel %vm1076_vm3, %v1144_v2, %v1143_v14  ;;  %v1867_v19 = vpack.c.bf16 %v1163_v8, %v1163_v8  ;;  %v1288_v2 = vld [vmem:[#allocation3 + $0x4] sm:$0x1]  ;;  %v1290_v4 = vld [vmem:[#allocation3 + $0x14] sm:$0x1] }
 0x28f   : > { %v1196_v20 = vunpack.c.l.b16 %v1860_v9  ;;  %v1197_v21 = vunpack.c.l.b16 %v1861_v11  ;;  %v1147_v22 = vsel %vm1079_vm4, %v1146_v3, %v1145_v18  ;;  %v1198_v23 = vunpack.c.l.b16 %v1862_v12  ;;  %v1289_v3 = vld [vmem:[#allocation3 + $0xc] sm:$0x1]  ;;  %v1291_v9 = vld [vmem:[#allocation3 + $0x1c] sm:$0x1] }
 0x290   : > { %v1199_v24 = vunpack.c.l.b16 %v1863_v13  ;;  %v1200_v25 = vunpack.c.l.b16 %v1864_v15  ;;  %v1149_v29 = vsel %vm1082_vm5, %v1148_v6, %v1147_v22  ;;  %v1201_v30 = vunpack.c.l.b16 %v1865_v16  ;;  %v1293_v15 = vld [vmem:[#allocation3 + $0x2c] sm:$0x1] }
 0x291   : > { %v1202_v31 = vunpack.c.l.b16 %v1866_v17  ;;  %v1203_v32 = vunpack.c.l.b16 %v1867_v19  ;;  %v1151_v36 = vsel %vm1085_vm6, %v1150_v7, %v1149_v29  ;;  %v1204_v37 = vrot.slane %v1197_v21, 7  ;;  %v1295_v21 = vld [vmem:[#allocation3 + $0x3c] sm:$0x1] }
 0x292   : > { %v1206_v38 = vrot.slane %v1198_v23, 6  ;;  %v1208_v39 = vrot.slane %v1199_v24, 5  ;;  %v1152_v41 = vpack.c.b16 %v1151_v36, %v1151_v36  ;;  %v1210_v42 = vrot.slane %v1200_v25, 4 }
 0x293   : > { %v1212_v43 = vrot.slane %v1201_v30, 3  ;;  %v1214_v44 = vrot.slane %v1202_v31, 2  ;;  %v1205_v50 = vsel %vm1067_vm0, %v1204_v37, %v1196_v20  ;;  %v1216_v51 = vrot.slane %v1203_v32, 1  ;;  %v1294_v20 = vld [vmem:[#allocation3 + $0x34] sm:$0x1] }
 0x294   : > { %v1868_v52 = vpack.c.bf16 %v1222_v26, %v1222_v26  ;;  %v1869_v45 = vpack.c.bf16 %v1223_v27, %v1223_v27  ;;  %1783 = vst [vmem:[%s2474_s27 + $0x4] sm:$0xf] %v1152_v41  ;;  %v1207_v53 = vsel %vm1070_vm1, %v1206_v38, %v1205_v50  ;;  %v1870_v46 = vpack.c.bf16 %v1224_v28, %v1224_v28  ;;  %v1354_v38 = vld [vmem:[#allocation3 + $0x5] sm:$0x1] }
 0x295   : > { %v1871_v54 = vpack.c.bf16 %v1225_v33, %v1225_v33  ;;  %v1872_v47 = vpack.c.bf16 %v1226_v34, %v1226_v34  ;;  %v1209_v48 = vsel %vm1073_vm2, %v1208_v39, %v1207_v53  ;;  %v1873_v55 = vpack.c.bf16 %v1227_v35, %v1227_v35  ;;  %v1358_v53 = vld [vmem:[#allocation3 + $0x25] sm:$0x1] }
 0x296   : > { %v1874_v56 = vpack.c.bf16 %v1228_v40, %v1228_v40  ;;  %v1875_v57 = vpack.c.bf16 %v1229_v49, %v1229_v49  ;;  %v1211_v58 = vsel %vm1076_vm3, %v1210_v42, %v1209_v48  ;;  %v1262_v59 = vunpack.c.l.b16 %v1868_v52  ;;  %v1357_v49 = vld [vmem:[#allocation3 + $0x1d] sm:$0x1] }
 0x297   : > { %v1263_v60 = vunpack.c.l.b16 %v1869_v45  ;;  %v1264_v61 = vunpack.c.l.b16 %v1870_v46  ;;  %v1213_v62 = vsel %vm1079_vm4, %v1212_v43, %v1211_v58  ;;  %v1265_v63 = vunpack.c.l.b16 %v1871_v54  ;;  %v1355_v43 = vld [vmem:[#allocation3 + $0xd] sm:$0x1] }
 0x298   : > { %v1266_v0 = vunpack.c.l.b16 %v1872_v47  ;;  %v1267_v1 = vunpack.c.l.b16 %v1873_v55  ;;  %v1215_v5 = vsel %vm1082_vm5, %v1214_v44, %v1213_v62  ;;  %v1268_v6 = vunpack.c.l.b16 %v1874_v56  ;;  %v1356_v44 = vld [vmem:[#allocation3 + $0x15] sm:$0x1]  ;;  %v1359_v46 = vld [vmem:[#allocation3 + $0x2d] sm:$0x1] }
 0x299   : > { %v1269_v7 = vunpack.c.l.b16 %v1875_v57  ;;  %v1270_v8 = vrot.slane %v1263_v60, 7  ;;  %v1217_v11 = vsel %vm1085_vm6, %v1216_v51, %v1215_v5  ;;  %v1272_v12 = vrot.slane %v1264_v61, 6  ;;  %v1360_v56 = vld [vmem:[#allocation3 + $0x35] sm:$0x1]  ;;  %v1361_v61 = vld [vmem:[#allocation3 + $0x3d] sm:$0x1] }
 0x29a   : > { %v1274_v13 = vrot.slane %v1265_v63, 5  ;;  %v1276_v14 = vrot.slane %v1266_v0, 4  ;;  %v1218_v16 = vpack.c.b16 %v1217_v11, %v1217_v11  ;;  %v1278_v18 = vrot.slane %v1267_v1, 3 }
 0x29b   : > { %v1271_v17 = vsel %vm1067_vm0, %v1270_v8, %v1262_v59  ;;  %v1280_v19 = vrot.slane %v1268_v6, 2  ;;  %v1282_v23 = vrot.slane %v1269_v7, 1  ;;  %v1876_v24 = vpack.c.bf16 %v1288_v2, %v1288_v2 }
 0x29c   : > { %v1273_v22 = vsel %vm1070_vm1, %v1272_v12, %v1271_v17  ;;  %v1877_v25 = vpack.c.bf16 %v1289_v3, %v1289_v3  ;;  %1792 = vst [vmem:[%s2474_s27 + $0x8] sm:$0xf] %v1218_v16  ;;  %v1878_v27 = vpack.c.bf16 %v1290_v4, %v1290_v4  ;;  %v1879_v28 = vpack.c.bf16 %v1291_v9, %v1291_v9 }
 0x29d   : > { %v1275_v26 = vsel %vm1073_vm2, %v1274_v13, %v1273_v22  ;;  %v1880_v29 = vpack.c.bf16 %v1292_v10, %v1292_v10  ;;  %v1881_v31 = vpack.c.bf16 %v1293_v15, %v1293_v15  ;;  %v1882_v32 = vpack.c.bf16 %v1294_v20, %v1294_v20  ;;  %v1422_v20 = vld [vmem:[#allocation3 + $0x16] sm:$0x1] }
 0x29e   : > { %v1277_v30 = vsel %vm1076_vm3, %v1276_v14, %v1275_v26  ;;  %v1883_v33 = vpack.c.bf16 %v1295_v21, %v1295_v21  ;;  %v1328_v35 = vunpack.c.l.b16 %v1876_v24  ;;  %v1329_v36 = vunpack.c.l.b16 %v1877_v25  ;;  %v1420_v14 = vld [vmem:[#allocation3 + $0x6] sm:$0x1]  ;;  %v1423_v21 = vld [vmem:[#allocation3 + $0x1e] sm:$0x1] }
 0x29f   : > { %v1279_v34 = vsel %vm1079_vm4, %v1278_v18, %v1277_v30  ;;  %v1330_v37 = vunpack.c.l.b16 %v1878_v27  ;;  %v1331_v40 = vunpack.c.l.b16 %v1879_v28  ;;  %v1332_v41 = vunpack.c.l.b16 %v1880_v29  ;;  %v1424_v26 = vld [vmem:[#allocation3 + $0x26] sm:$0x1]  ;;  %v1425_v27 = vld [vmem:[#allocation3 + $0x2e] sm:$0x1] }
 0x2a0   : > { %v1281_v39 = vsel %vm1082_vm5, %v1280_v19, %v1279_v34  ;;  %v1333_v42 = vunpack.c.l.b16 %v1881_v31  ;;  %v1334_v51 = vunpack.c.l.b16 %v1882_v32  ;;  %v1335_v52 = vunpack.c.l.b16 %v1883_v33  ;;  %v1421_v19 = vld [vmem:[#allocation3 + $0xe] sm:$0x1]  ;;  %v1426_v32 = vld [vmem:[#allocation3 + $0x36] sm:$0x1] }
 0x2a1   : > { %v1283_v50 = vsel %vm1085_vm6, %v1282_v23, %v1281_v39  ;;  %v1336_v45 = vrot.slane %v1329_v36, 7  ;;  %v1338_v47 = vrot.slane %v1330_v37, 6  ;;  %v1340_v48 = vrot.slane %v1331_v40, 5  ;;  %v1427_v36 = vld [vmem:[#allocation3 + $0x3e] sm:$0x1] }
 0x2a2   : > { %v1284_v54 = vpack.c.b16 %v1283_v50, %v1283_v50  ;;  %v1342_v55 = vrot.slane %v1332_v41, 4  ;;  %v1344_v58 = vrot.slane %v1333_v42, 3  ;;  %v1346_v59 = vrot.slane %v1334_v51, 2 }
 0x2a3   : > { %v1337_v57 = vsel %vm1067_vm0, %v1336_v45, %v1328_v35  ;;  %v1348_v60 = vrot.slane %v1335_v52, 1  ;;  %v1884_v63 = vpack.c.bf16 %v1354_v38, %v1354_v38  ;;  %v1885_v0 = vpack.c.bf16 %v1355_v43, %v1355_v43 }
 0x2a4   : > { %1801 = vst [vmem:[%s2474_s27 + $0xc] sm:$0xf] %v1284_v54  ;;  %v1339_v62 = vsel %vm1070_vm1, %v1338_v47, %v1337_v57  ;;  %v1886_v1 = vpack.c.bf16 %v1356_v44, %v1356_v44  ;;  %v1887_v3 = vpack.c.bf16 %v1357_v49, %v1357_v49  ;;  %v1888_v4 = vpack.c.bf16 %v1358_v53, %v1358_v53 }
 0x2a5   : > { %v1341_v2 = vsel %vm1073_vm2, %v1340_v48, %v1339_v62  ;;  %v1889_v5 = vpack.c.bf16 %v1359_v46, %v1359_v46  ;;  %v1890_v7 = vpack.c.bf16 %v1360_v56, %v1360_v56  ;;  %v1891_v8 = vpack.c.bf16 %v1361_v61, %v1361_v61  ;;  %v1486_v48 = vld [vmem:[#allocation3 + $0x7] sm:$0x1]  ;;  %v1488_v56 = vld [vmem:[#allocation3 + $0x17] sm:$0x1]  ;;  %v1489_v61 = vld [vmem:[#allocation3 + $0x1f] sm:$0x1] }
 0x2a6   : > { %v1343_v6 = vsel %vm1076_vm3, %v1342_v55, %v1341_v2  ;;  %v1394_v9 = vunpack.c.l.b16 %v1884_v63  ;;  %v1395_v11 = vunpack.c.l.b16 %v1885_v0  ;;  %v1396_v12 = vunpack.c.l.b16 %v1886_v1  ;;  %v1487_v55 = vld [vmem:[#allocation3 + $0xf] sm:$0x1]  ;;  %v1490_v62 = vld [vmem:[#allocation3 + $0x27] sm:$0x1] }
 0x2a7   : > { %v1345_v10 = vsel %vm1079_vm4, %v1344_v58, %v1343_v6  ;;  %v1397_v13 = vunpack.c.l.b16 %v1887_v3  ;;  %v1398_v16 = vunpack.c.l.b16 %v1888_v4  ;;  %v1399_v17 = vunpack.c.l.b16 %v1889_v5  ;;  %v1491_v63 = vld [vmem:[#allocation3 + $0x2f] sm:$0x1]  ;;  %v1492_v4 = vld [vmem:[#allocation3 + $0x37] sm:$0x1] }
 0x2a8   : > { %v1347_v15 = vsel %vm1082_vm5, %v1346_v59, %v1345_v10  ;;  %v1400_v18 = vunpack.c.l.b16 %v1890_v7  ;;  %v1401_v23 = vunpack.c.l.b16 %v1891_v8  ;;  %v1402_v24 = vrot.slane %v1395_v11, 7 }
 0x2a9   : > { %v1349_v22 = vsel %vm1085_vm6, %v1348_v60, %v1347_v15  ;;  %v1404_v25 = vrot.slane %v1396_v12, 6  ;;  %v1406_v29 = vrot.slane %v1397_v13, 5  ;;  %v1408_v30 = vrot.slane %v1398_v16, 4 }
 0x2aa   : > { %v1350_v28 = vpack.c.b16 %v1349_v22, %v1349_v22  ;;  %v1410_v31 = vrot.slane %v1399_v17, 3  ;;  %v1403_v33 = vsel %vm1067_vm0, %v1402_v24, %v1394_v9  ;;  %v1412_v34 = vrot.slane %v1400_v18, 2  ;;  %v1493_v9 = vld [vmem:[#allocation3 + $0x3f] sm:$0x1] }
 0x2ab   : > { %v1414_v35 = vrot.slane %v1401_v23, 1  ;;  %v1892_v37 = vpack.c.bf16 %v1420_v14, %v1420_v14  ;;  %v1405_v38 = vsel %vm1070_vm1, %v1404_v25, %v1403_v33  ;;  %v1893_v39 = vpack.c.bf16 %v1421_v19, %v1421_v19 }
 0x2ac   : > { %1810 = vst [vmem:[%s2474_s27 + $0x10] sm:$0xf] %v1350_v28  ;;  %v1894_v40 = vpack.c.bf16 %v1422_v20, %v1422_v20  ;;  %v1895_v41 = vpack.c.bf16 %v1423_v21, %v1423_v21  ;;  %v1407_v42 = vsel %vm1073_vm2, %v1406_v29, %v1405_v38  ;;  %v1896_v43 = vpack.c.bf16 %v1424_v26, %v1424_v26 }
 0x2ad   : > { %v1897_v44 = vpack.c.bf16 %v1425_v27, %v1425_v27  ;;  %v1898_v49 = vpack.c.bf16 %v1426_v32, %v1426_v32  ;;  %v1409_v50 = vsel %vm1076_vm3, %v1408_v30, %v1407_v42  ;;  %v1899_v51 = vpack.c.bf16 %v1427_v36, %v1427_v36 }
 0x2ae   : > { %v1460_v52 = vunpack.c.l.b16 %v1892_v37  ;;  %v1461_v45 = vunpack.c.l.b16 %v1893_v39  ;;  %v1411_v53 = vsel %vm1079_vm4, %v1410_v31, %v1409_v50  ;;  %v1462_v46 = vunpack.c.l.b16 %v1894_v40 }
 0x2af   : > { %v1463_v54 = vunpack.c.l.b16 %v1895_v41  ;;  %v1464_v47 = vunpack.c.l.b16 %v1896_v43  ;;  %v1413_v57 = vsel %vm1082_vm5, %v1412_v34, %v1411_v53  ;;  %v1465_v58 = vunpack.c.l.b16 %v1897_v44 }
 0x2b0   : > { %v1466_v59 = vunpack.c.l.b16 %v1898_v49  ;;  %v1467_v60 = vunpack.c.l.b16 %v1899_v51  ;;  %v1415_v0 = vsel %vm1085_vm6, %v1414_v35, %v1413_v57  ;;  %v1468_v1 = vrot.slane %v1461_v45, 7 }
 0x2b1   : > { %v1470_v2 = vrot.slane %v1462_v46, 6  ;;  %v1472_v3 = vrot.slane %v1463_v54, 5  ;;  %v1416_v5 = vpack.c.b16 %v1415_v0, %v1415_v0  ;;  %v1474_v6 = vrot.slane %v1464_v47, 4 }
 0x2b2   : > { %v1476_v7 = vrot.slane %v1465_v58, 3  ;;  %v1478_v8 = vrot.slane %v1466_v59, 2  ;;  %v1469_v10 = vsel %vm1067_vm0, %v1468_v1, %v1460_v52  ;;  %v1480_v11 = vrot.slane %v1467_v60, 1 }
 0x2b3   : > { %v1900_v12 = vpack.c.bf16 %v1486_v48, %v1486_v48  ;;  %v1901_v13 = vpack.c.bf16 %v1487_v55, %v1487_v55  ;;  %1819 = vst [vmem:[%s2474_s27 + $0x14] sm:$0xf] %v1416_v5  ;;  %v1471_v14 = vsel %vm1070_vm1, %v1470_v2, %v1469_v10  ;;  %v1902_v15 = vpack.c.bf16 %v1488_v56, %v1488_v56 }
 0x2b4   : > { %v1903_v16 = vpack.c.bf16 %v1489_v61, %v1489_v61  ;;  %v1904_v17 = vpack.c.bf16 %v1490_v62, %v1490_v62  ;;  %v1473_v18 = vsel %vm1073_vm2, %v1472_v3, %v1471_v14  ;;  %v1905_v19 = vpack.c.bf16 %v1491_v63, %v1491_v63 }
 0x2b5   : > { %v1906_v20 = vpack.c.bf16 %v1492_v4, %v1492_v4  ;;  %v1907_v21 = vpack.c.bf16 %v1493_v9, %v1493_v9  ;;  %v1475_v22 = vsel %vm1076_vm3, %v1474_v6, %v1473_v18  ;;  %v1526_v23 = vunpack.c.l.b16 %v1900_v12 }
 0x2b6   : > { %v1527_v24 = vunpack.c.l.b16 %v1901_v13  ;;  %v1528_v25 = vunpack.c.l.b16 %v1902_v15  ;;  %v1477_v26 = vsel %vm1079_vm4, %v1476_v7, %v1475_v22  ;;  %v1529_v27 = vunpack.c.l.b16 %v1903_v16 }
 0x2b7   : > { %v1530_v28 = vunpack.c.l.b16 %v1904_v17  ;;  %v1531_v29 = vunpack.c.l.b16 %v1905_v19  ;;  %v1479_v30 = vsel %vm1082_vm5, %v1478_v8, %v1477_v26  ;;  %v1532_v31 = vunpack.c.l.b16 %v1906_v20 }
 0x2b8   : > { %v1533_v32 = vunpack.c.l.b16 %v1907_v21  ;;  %v1534_v33 = vrot.slane %v1527_v24, 7  ;;  %v1481_v34 = vsel %vm1085_vm6, %v1480_v11, %v1479_v30  ;;  %v1536_v35 = vrot.slane %v1528_v25, 6 }
 0x2b9   : > { %v1538_v36 = vrot.slane %v1529_v27, 5  ;;  %v1540_v37 = vrot.slane %v1530_v28, 4  ;;  %v1482_v38 = vpack.c.b16 %v1481_v34, %v1481_v34  ;;  %v1542_v40 = vrot.slane %v1531_v29, 3 }
 0x2ba   : > { %v1535_v39 = vsel %vm1067_vm0, %v1534_v33, %v1526_v23  ;;  %v1544_v42 = vrot.slane %v1532_v31, 2  ;;  %v1546_v44 = vrot.slane %v1533_v32, 1 }
 0x2bb   : > { %v1537_v41 = vsel %vm1070_vm1, %v1536_v35, %v1535_v39  ;;  %1828 = vst [vmem:[%s2474_s27 + $0x18] sm:$0xf] %v1482_v38 }
 0x2bc   : > { %v1539_v43 = vsel %vm1073_vm2, %v1538_v36, %v1537_v41 }
 0x2bd   : > { %v1541_v49 = vsel %vm1076_vm3, %v1540_v37, %v1539_v43 }
 0x2be   : > { %v1543_v50 = vsel %vm1079_vm4, %v1542_v40, %v1541_v49 }
 0x2bf   : > { %v1545_v51 = vsel %vm1082_vm5, %v1544_v42, %v1543_v50 }
 0x2c0   : > { %v1547_v52 = vsel %vm1085_vm6, %v1546_v44, %v1545_v51 }
 0x2c1   : > { %v1548_v45 = vpack.c.b16 %v1547_v52, %v1547_v52 }
 0x2c3   : > { %1837 = vst [vmem:[%s2474_s27 + $0x1c] sm:$0xf] %v1548_v45 }
 0x2c4   : > { %2218 = shalt.err (!%p2215_p1)
}
 0x2c5   : > { %s2219_s27 = scalar_lea.hbm %s2609_s9, 512  ;;  %s2223_s24 = scalar_lea.hbm %s2665_s4, 1024 }
 0x2c6   : > { %p2220_p4 = scmp.ne.s32.totalorder %s2609_s9, %s2219_s27  ;;  %p2224_p3 = scmp.lt.s32.totalorder %s2609_s9, %s2665_s4 }
 0x2c7   : > { %p2225_p8 = scmp.lt.s32.totalorder %s2223_s24, %s2219_s27 }
 0x2c8   : > { %p2221_p6 = pnand %p2220_p4, %p2433_p7 }
 0x2c9   : > { %p2226_p9 = por %p2225_p8, %p2224_p3 }
 0x2ca   : > { %p2222_p12 = pneg %p2221_p6 }
 0x2cc   : > { %p2227_p11 = pnand %p2226_p9, %p2222_p12 }
 0x2ce   : > { %2230 = shalt.err (!%p2227_p11)
}
 0x2cf   : > { %s2310_s29 = smov 64   ;;  %s2311_s5 = smov 128  }
 0x2d0   : > { %s2312_s8 = smov 4  }
 0x2d1   : > { %1918 = dma.vmem_to_hbm [thread:$0]  (%p2433_p7), %s2612_s6, 512, %s2609_s9, %s1553_s18, %s2310_s29, %s2311_s5, %s2312_s8  }
 0x2d2 PF: > { %s1583_s11 = sand.u32 1, %s2273_s15   ;;  %p2679_p2 = scmp.ne.s32.totalorder %s2672_s26, 0 }
 0x2d3   : > { %p2680_p13 = scmp.ge.s32.totalorder %s2293_s20, 2  ;;  %s1584_s14 = scalar_lea.sflag [#allocation8], %s1583_s11 }
 0x2d5   : > { %p1932_p0 = pnand %p2680_p13, %p2679_p2 }
 0x2d7   : > { %p1933_p5 = pneg %p1932_p0 }
 0x2d9   : > { %2268 = dma.done.wait (%p1933_p5), %s1584_s14, 512  }
 0x2da   : > { %2270 = vsyncadd (%p1933_p5), %s1584_s14, 4294966784  ;;  %s21_s20 = sadd.s32 1, %s2293_s20   ;;  %s2681_s15 = smov %s2277_s16 }
 0x2db   : > { %p18_p10 = scmp.ge.s32.totalorder %s21_s20, 4   ;;  %s2682_s16 = smov %s2281_s17 }
 0x2dc   : > { %s2683_s17 = smov %s2442_s7  ;;  %s2684_s18 = smov %s2289_s19 }
 0x2dd   : > { %s2685_s19 = smov %s2687_s21  ;;  %20 = sbr.rel (!%p18_p10) target bundleno = 7 (0x7), region = 120 }
 0x2e2   :  { %1589 = vsyncpa [#allocation7], 1 }
 0x2e3   :  { %1591 = vsyncpa [#allocation7 + $0x1], 1 }
 0x2e4   :  { %1592 = vsyncpa [#allocation10], 1 }
 0x2e5   :  { %1593 = vsyncpa [#allocation8], 1 }
 0x2e6   :  { %1595 = vsyncpa [#allocation8 + $0x1], 1 }

</bundles_post_ra>
